<compile_context>
chip_gen: v5e
topology: v5e:2x2
jax: 0.10.0
libtpu: 0.0.40
codegen_flags: <defaults>
</compile_context>

<pallas_src>
import functools

import jax
import jax.numpy as jnp
from jax.experimental import pallas as pl
from jax.experimental.pallas import tpu as pltpu

LANE = 128
TILE_B = 128  # MXU row tile: saturates v5e (4x128^2); bump to 256 on v6e/v7x.


def _policy_step_kernel(obs_ref, h0_ref, w_enc_ref, w_gru_ref, w_act_ref,
                        b_pack_ref, out_ref, h_scr, *, H, A_OUT):
    t = pl.program_id(1)

    # (Re)load the initial hidden state at the first time step of each batch tile.
    @pl.when(t == 0)
    def _():
        h_scr[...] = h0_ref[...]

    obs = obs_ref[0]            # (TILE_B, OBS) f32
    h = h_scr[...]              # (TILE_B, H)   f32

    # Packed biases (8, 128):
    #   row 0 = b_enc                  (lanes 0:H)
    #   row 1 = [b_ir+b_hr | b_iz+b_hz | b_in | b_hn]   (full 128-lane row)
    #   row 2 = b_act                  (lanes 0:A_OUT)
    b_enc = b_pack_ref[0:1, 0:H]
    b_gate = b_pack_ref[1:2, :]
    b_act = b_pack_ref[2:3, 0:A_OUT]

    # Encoder: Linear + ReLU (bf16 MXU operands, f32 accumulation).
    x = jnp.dot(obs.astype(jnp.bfloat16), w_enc_ref[...],
                preferred_element_type=jnp.float32)
    x = jnp.maximum(x + b_enc, 0.0)                              # (TILE_B, H)

    # Single fused GRU gate matmul (f32 to keep the recurrent path drift-free).
    xh = jnp.concatenate([x, h], axis=-1)                        # (TILE_B, 2H)
    g = jnp.dot(xh, w_gru_ref[...],
                preferred_element_type=jnp.float32) + b_gate     # (TILE_B, 4H=128)

    r = jax.nn.sigmoid(g[:, 0:H])
    z = jax.nn.sigmoid(g[:, H:2 * H])
    n = jnp.tanh(g[:, 2 * H:3 * H] + r * g[:, 3 * H:4 * H])
    h_new = (1.0 - z) * n + z * h                                # (TILE_B, H)

    # Deterministic action head, padded to A_OUT = 128 - H lanes so the packed
    # [h_new | action] output tile is exactly 128 lanes (single unmasked store).
    mean = jnp.dot(h_new.astype(jnp.bfloat16), w_act_ref[...],
                   preferred_element_type=jnp.float32) + b_act
    action = jnp.tanh(mean)                                      # (TILE_B, A_OUT)

    out_ref[0] = jnp.concatenate([h_new, action], axis=-1)       # (TILE_B, 128)
    h_scr[...] = h_new                                           # carry to t+1


def fuse_params(raw, hidden_size, action_dim):
    """Fold per-gate reference parameters into the fused kernel layout."""
    H = hidden_size
    A_OUT = LANE - H
    # TODO(synk): packing hard-codes 4*H == 128 and action_dim <= 128 - H.
    assert 4 * H == LANE, "fused gate layout assumes 4*H == 128"
    assert 0 < action_dim <= A_OUT, "action_dim must fit in the packed output"

    zH = jnp.zeros((H, H), jnp.float32)
    w_gru = jnp.concatenate([
        jnp.concatenate([raw["w_ir"], raw["w_iz"], raw["w_in"], zH], axis=1),
        jnp.concatenate([raw["w_hr"], raw["w_hz"], zH, raw["w_hn"]], axis=1),
    ], axis=0)                                                   # (2H, 4H)

    w_act = jnp.zeros((H, A_OUT), jnp.float32).at[:, :action_dim].set(raw["w_act"])

    b_pack = jnp.zeros((8, LANE), jnp.float32)
    b_pack = b_pack.at[0, :H].set(raw["b_enc"])
    b_pack = b_pack.at[1, :].set(jnp.concatenate([
        raw["b_ir"] + raw["b_hr"], raw["b_iz"] + raw["b_hz"],
        raw["b_in"], raw["b_hn"]]))
    b_pack = b_pack.at[2, :action_dim].set(raw["b_act"])

    return {
        "w_enc": raw["w_enc"].astype(jnp.bfloat16),
        "w_gru": w_gru,                       # f32 — recurrent path stays f32
        "w_act": w_act.astype(jnp.bfloat16),
        "b_pack": b_pack,                     # f32
    }


def eval_policy_rollout(obs_seq, hidden, fused, action_dim, *, tile_b=TILE_B):
    """Run T deterministic steps inside ONE pallas_call (weights stay resident).

    obs_seq: (T, B, OBS); hidden: (B, H). Returns (actions (T,B,A), h_final (B,H)).
    """
    T, B, obs_dim = obs_seq.shape
    H = hidden.shape[-1]
    A_OUT = LANE - H
    nb = max(1, pl.cdiv(B, tile_b))
    Bp = nb * tile_b

    obs_p = jnp.zeros((T, Bp, obs_dim), jnp.float32).at[:, :B].set(obs_seq)
    hid_p = jnp.zeros((Bp, H), jnp.float32).at[:B].set(hidden)

    kernel = functools.partial(_policy_step_kernel, H=H, A_OUT=A_OUT)

    out = pl.pallas_call(
        kernel,
        out_shape=jax.ShapeDtypeStruct((T, Bp, LANE), jnp.float32),
        grid_spec=pltpu.PrefetchScalarGridSpec(
            num_scalar_prefetch=0,
            grid=(nb, T),
            in_specs=[
                pl.BlockSpec((1, tile_b, obs_dim), lambda b, t: (t, b, 0)),
                pl.BlockSpec((tile_b, H), lambda b, t: (b, 0)),
                pl.BlockSpec((obs_dim, H), lambda b, t: (0, 0)),
                pl.BlockSpec((2 * H, 4 * H), lambda b, t: (0, 0)),
                pl.BlockSpec((H, A_OUT), lambda b, t: (0, 0)),
                pl.BlockSpec((8, LANE), lambda b, t: (0, 0)),
            ],
            out_specs=pl.BlockSpec((1, tile_b, LANE), lambda b, t: (t, b, 0)),
            scratch_shapes=[pltpu.VMEM((tile_b, H), jnp.float32)],
        ),
        compiler_params=pltpu.CompilerParams(
            dimension_semantics=("parallel", "arbitrary")),
    )(obs_p, hid_p, fused["w_enc"], fused["w_gru"], fused["w_act"],
      fused["b_pack"])

    actions = out[:, :B, H:H + action_dim]        # (T, B, A)
    h_final = out[T - 1, :B, :H]                  # (B, H)
    return actions, h_final


def eval_policy_forward(obs, hidden, fused, action_dim):
    """Module semantics: single deterministic step -> (action, hidden_state)."""
    actions, h_new = eval_policy_rollout(obs[None], hidden, fused, action_dim)
    return actions[0], h_new


def init_raw_params(key, obs_dim, hidden_size, action_dim):
    """Deterministic synthetic parameters in the reference per-gate layout."""
    keys = jax.random.split(key, 8)

    def lin(k, i, o, scale=0.1):
        return scale * jax.random.normal(k, (i, o), dtype=jnp.float32)

    H = hidden_size
    return {
        "w_enc": lin(keys[0], obs_dim, H),
        "b_enc": jnp.zeros((H,), jnp.float32),
        "w_ir": lin(keys[1], H, H), "w_iz": lin(keys[2], H, H), "w_in": lin(keys[3], H, H),
        "b_ir": 0.01 * jnp.ones((H,), jnp.float32),
        "b_iz": 0.01 * jnp.ones((H,), jnp.float32),
        "b_in": 0.01 * jnp.ones((H,), jnp.float32),
        "w_hr": lin(keys[4], H, H), "w_hz": lin(keys[5], H, H), "w_hn": lin(keys[6], H, H),
        "b_hr": jnp.zeros((H,), jnp.float32),
        "b_hz": jnp.zeros((H,), jnp.float32),
        "b_hn": jnp.zeros((H,), jnp.float32),
        "w_act": lin(keys[7], H, action_dim),
        "b_act": jnp.zeros((action_dim,), jnp.float32),
    }


def _reference_step(obs, h, raw):
    """Pure-JAX f32 reference (PyTorch GRUCell semantics)."""
    x = jax.nn.relu(obs @ raw["w_enc"] + raw["b_enc"])
    r = jax.nn.sigmoid(x @ raw["w_ir"] + raw["b_ir"] + h @ raw["w_hr"] + raw["b_hr"])
    z = jax.nn.sigmoid(x @ raw["w_iz"] + raw["b_iz"] + h @ raw["w_hz"] + raw["b_hz"])
    n = jnp.tanh(x @ raw["w_in"] + raw["b_in"] + r * (h @ raw["w_hn"] + raw["b_hn"]))
    h_new = (1.0 - z) * n + z * h
    action = jnp.tanh(h_new @ raw["w_act"] + raw["b_act"])
    return action, h_new


if __name__ == "__main__":
    B, OBS_DIM, HIDDEN, ACTION, T = 2, 16, 32, 4, 8   # recurrent_hidden_size = 32

    key = jax.random.PRNGKey(0)
    k_obs, k_h, k_p, k_seq = jax.random.split(key, 4)
    obs = jax.random.normal(k_obs, (B, OBS_DIM), dtype=jnp.float32)
    hidden = jax.random.normal(k_h, (B, HIDDEN), dtype=jnp.float32)

    raw = init_raw_params(k_p, OBS_DIM, HIDDEN, ACTION)
    fused = fuse_params(raw, HIDDEN, ACTION)

    # --- Single-step forward (module semantics). ---
    action, hidden_state = eval_policy_forward(obs, hidden, fused, ACTION)
    jax.block_until_ready((action, hidden_state))
    assert action.shape == (B, ACTION)
    assert hidden_state.shape == (B, HIDDEN)

    ref_action, ref_hidden = _reference_step(obs, hidden, raw)
    assert bool(jnp.allclose(action, ref_action, atol=5e-2))
    assert bool(jnp.allclose(hidden_state, ref_hidden, atol=5e-2))

    # --- Multi-step rollout: time loop amortized inside one pallas_call. ---
    obs_seq = jax.random.normal(k_seq, (T, B, OBS_DIM), dtype=jnp.float32)
    actions, h_final = eval_policy_rollout(obs_seq, hidden, fused, ACTION)
    jax.block_until_ready((actions, h_final))
    assert actions.shape == (T, B, ACTION)
    assert h_final.shape == (B, HIDDEN)
    assert bool(jnp.all(jnp.isfinite(actions))) and bool(jnp.all(jnp.isfinite(h_final)))

    print("KERNEL_OK")
</pallas_src>

<mosaic_0001>
module attributes {stable_mosaic.version = 11 : i64} {
  func.func @_policy_step_kernel(%arg0: i32, %arg1: i32, %arg2: memref<1x128x16xf32, #tpu.memory_space<vmem>>, %arg3: memref<128x32xf32, #tpu.memory_space<vmem>>, %arg4: memref<16x32xbf16, #tpu.memory_space<vmem>>, %arg5: memref<64x128xf32, #tpu.memory_space<vmem>>, %arg6: memref<32x96xbf16, #tpu.memory_space<vmem>>, %arg7: memref<8x128xf32, #tpu.memory_space<vmem>>, %arg8: memref<1x128x128xf32, #tpu.memory_space<vmem>>, %arg9: memref<128x32xf32, #tpu.memory_space<vmem>>) attributes {dimension_semantics = [#tpu.dimension_semantics<parallel>, #tpu.dimension_semantics<arbitrary>], iteration_bounds = array<i64: 1, 1>, scalar_prefetch = 0 : i64, scratch_operands = 1 : i64, tpu.core_type = #tpu.core_type<tc>, window_params = [{transform_indices = @transform_0, window_bounds = array<i64: 1, 128, 16>}, {transform_indices = @transform_1, window_bounds = array<i64: 128, 32>}, {pipeline_mode = #tpu.pipeline_mode<synchronous>, transform_indices = @transform_2, window_bounds = array<i64: 16, 32>}, {pipeline_mode = #tpu.pipeline_mode<synchronous>, transform_indices = @transform_3, window_bounds = array<i64: 64, 128>}, {pipeline_mode = #tpu.pipeline_mode<synchronous>, transform_indices = @transform_4, window_bounds = array<i64: 32, 96>}, {pipeline_mode = #tpu.pipeline_mode<synchronous>, transform_indices = @transform_5, window_bounds = array<i64: 8, 128>}, {transform_indices = @transform_6, window_bounds = array<i64: 1, 128, 128>}]} {
    %c0_i32 = arith.constant 0 : i32
    %0 = arith.cmpi eq, %arg1, %c0_i32 : i32
    %1 = arith.extui %0 : i1 to i32
    %c0_i32_0 = arith.constant 0 : i32
    %2 = arith.cmpi ne, %1, %c0_i32_0 : i32
    scf.if %2 {
      %c0_26 = arith.constant 0 : index
      %c0_27 = arith.constant 0 : index
      %54 = vector.load %arg3[%c0_26, %c0_27] : memref<128x32xf32, #tpu.memory_space<vmem>>, vector<128x32xf32>
      %c0_28 = arith.constant 0 : index
      %c0_29 = arith.constant 0 : index
      %55 = vector.load %arg9[%c0_28, %c0_29] : memref<128x32xf32, #tpu.memory_space<vmem>>, vector<128x32xf32>
      tpu.vector_store %arg9[%c0_28, %c0_29], %54 {strides = array<i32>} : memref<128x32xf32, #tpu.memory_space<vmem>>, vector<128x32xf32>,
    } else {
    }
    %c0 = arith.constant 0 : index
    %c0_1 = arith.constant 0 : index
    %c0_2 = arith.constant 0 : index
    %3 = vector.load %arg2[%c0, %c0_1, %c0_2] : memref<1x128x16xf32, #tpu.memory_space<vmem>>, vector<1x128x16xf32>
    %4 = vector.shape_cast %3 : vector<1x128x16xf32> to vector<128x16xf32>
    %c0_3 = arith.constant 0 : index
    %c0_4 = arith.constant 0 : index
    %5 = vector.load %arg9[%c0_3, %c0_4] : memref<128x32xf32, #tpu.memory_space<vmem>>, vector<128x32xf32>
    %c0_5 = arith.constant 0 : index
    %c0_6 = arith.constant 0 : index
    %6 = vector.load %arg7[%c0_5, %c0_6] : memref<8x128xf32, #tpu.memory_space<vmem>>, vector<1x32xf32>
    %c1 = arith.constant 1 : index
    %c0_7 = arith.constant 0 : index
    %7 = vector.load %arg7[%c1, %c0_7] : memref<8x128xf32, #tpu.memory_space<vmem>>, vector<1x128xf32>
    %c2 = arith.constant 2 : index
    %c0_8 = arith.constant 0 : index
    %8 = vector.load %arg7[%c2, %c0_8] : memref<8x128xf32, #tpu.memory_space<vmem>>, vector<1x96xf32>
    %9 = arith.truncf %4 : vector<128x16xf32> to vector<128x16xbf16>
    %c0_9 = arith.constant 0 : index
    %c0_10 = arith.constant 0 : index
    %10 = vector.load %arg4[%c0_9, %c0_10] : memref<16x32xbf16, #tpu.memory_space<vmem>>, vector<16x32xbf16>
    %cst = arith.constant dense<0.000000e+00> : vector<128x32xf32>
    %11 = tpu.matmul %9, %10, %cst {dimension_numbers = #tpu.dot_dimension_numbers<[1], [0], [0], [1], [0, 0, 1, 1], [], []>} : vector<128x16xbf16>, vector<16x32xbf16>, vector<128x32xf32> -> vector<128x32xf32>
    %12 = vector.broadcast %6 : vector<1x32xf32> to vector<128x32xf32>
    %13 = arith.addf %11, %12 : vector<128x32xf32>
    %cst_11 = arith.constant 0.000000e+00 : f32
    %14 = vector.broadcast %cst_11 : f32 to vector<128x32xf32>
    %15 = arith.maximumf %13, %14 : vector<128x32xf32>
    %16 = tpu.concatenate %15, %5 in 1 : vector<128x32xf32>, vector<128x32xf32> -> vector<128x64xf32>
    %c0_12 = arith.constant 0 : index
    %c0_13 = arith.constant 0 : index
    %17 = vector.load %arg5[%c0_12, %c0_13] : memref<64x128xf32, #tpu.memory_space<vmem>>, vector<64x128xf32>
    %cst_14 = arith.constant dense<0.000000e+00> : vector<128x128xf32>
    %18 = tpu.matmul %16, %17, %cst_14 {dimension_numbers = #tpu.dot_dimension_numbers<[1], [0], [0], [1], [0, 0, 1, 1], [], []>} : vector<128x64xf32>, vector<64x128xf32>, vector<128x128xf32> -> vector<128x128xf32>
    %19 = vector.broadcast %7 : vector<1x128xf32> to vector<128x128xf32>
    %20 = arith.addf %18, %19 : vector<128x128xf32>
    %21 = vector.extract_strided_slice %20 {offsets = [0, 0], sizes = [128, 32], strides = [1, 1]} : vector<128x128xf32> to vector<128x32xf32>
    %22 = arith.negf %21 : vector<128x32xf32>
    %23 = math.exp %22 : vector<128x32xf32>
    %cst_15 = arith.constant 1.000000e+00 : f32
    %24 = vector.broadcast %cst_15 : f32 to vector<128x32xf32>
    %25 = arith.addf %24, %23 : vector<128x32xf32>
    %26 = arith.divf %24, %25 : vector<128x32xf32>
    %27 = vector.extract_strided_slice %20 {offsets = [0, 32], sizes = [128, 32], strides = [1, 1]} : vector<128x128xf32> to vector<128x32xf32>
    %28 = arith.negf %27 : vector<128x32xf32>
    %29 = math.exp %28 : vector<128x32xf32>
    %cst_16 = arith.constant 1.000000e+00 : f32
    %30 = vector.broadcast %cst_16 : f32 to vector<128x32xf32>
    %31 = arith.addf %30, %29 : vector<128x32xf32>
    %32 = arith.divf %30, %31 : vector<128x32xf32>
    %33 = vector.extract_strided_slice %20 {offsets = [0, 64], sizes = [128, 32], strides = [1, 1]} : vector<128x128xf32> to vector<128x32xf32>
    %34 = vector.extract_strided_slice %20 {offsets = [0, 96], sizes = [128, 32], strides = [1, 1]} : vector<128x128xf32> to vector<128x32xf32>
    %35 = arith.mulf %26, %34 : vector<128x32xf32>
    %36 = arith.addf %33, %35 : vector<128x32xf32>
    %37 = math.tanh %36 : vector<128x32xf32>
    %cst_17 = arith.constant 1.000000e+00 : f32
    %38 = vector.broadcast %cst_17 : f32 to vector<128x32xf32>
    %39 = arith.subf %38, %32 : vector<128x32xf32>
    %40 = arith.mulf %39, %37 : vector<128x32xf32>
    %41 = arith.mulf %32, %5 : vector<128x32xf32>
    %42 = arith.addf %40, %41 : vector<128x32xf32>
    %43 = arith.truncf %42 : vector<128x32xf32> to vector<128x32xbf16>
    %c0_18 = arith.constant 0 : index
    %c0_19 = arith.constant 0 : index
    %44 = vector.load %arg6[%c0_18, %c0_19] : memref<32x96xbf16, #tpu.memory_space<vmem>>, vector<32x96xbf16>
    %cst_20 = arith.constant dense<0.000000e+00> : vector<128x96xf32>
    %45 = tpu.matmul %43, %44, %cst_20 {dimension_numbers = #tpu.dot_dimension_numbers<[1], [0], [0], [1], [0, 0, 1, 1], [], []>} : vector<128x32xbf16>, vector<32x96xbf16>, vector<128x96xf32> -> vector<128x96xf32>
    %46 = vector.broadcast %8 : vector<1x96xf32> to vector<128x96xf32>
    %47 = arith.addf %45, %46 : vector<128x96xf32>
    %48 = math.tanh %47 : vector<128x96xf32>
    %49 = tpu.concatenate %42, %48 in 1 : vector<128x32xf32>, vector<128x96xf32> -> vector<128x128xf32>
    %c0_21 = arith.constant 0 : index
    %c0_22 = arith.constant 0 : index
    %c0_23 = arith.constant 0 : index
    %50 = vector.load %arg8[%c0_21, %c0_22, %c0_23] : memref<1x128x128xf32, #tpu.memory_space<vmem>>, vector<1x128x128xf32>
    %51 = vector.shape_cast %50 : vector<1x128x128xf32> to vector<128x128xf32>
    %52 = vector.shape_cast %49 : vector<128x128xf32> to vector<1x128x128xf32>
    tpu.vector_store %arg8[%c0_21, %c0_22, %c0_23], %52 {strides = array<i32>} : memref<1x128x128xf32, #tpu.memory_space<vmem>>, vector<1x128x128xf32>,
    %c0_24 = arith.constant 0 : index
    %c0_25 = arith.constant 0 : index
    %53 = vector.load %arg9[%c0_24, %c0_25] : memref<128x32xf32, #tpu.memory_space<vmem>>, vector<128x32xf32>
    tpu.vector_store %arg9[%c0_24, %c0_25], %42 {strides = array<i32>} : memref<128x32xf32, #tpu.memory_space<vmem>>, vector<128x32xf32>,
    return
  }
  func.func @transform_0(%arg0: i32, %arg1: i32) -> (i32, i32, i32) {
    %c0_i32 = arith.constant 0 : i32
    %c0_i32_0 = arith.constant 0 : i32
    return %arg1, %arg0, %c0_i32 : i32, i32, i32
  }
  func.func @transform_1(%arg0: i32, %arg1: i32) -> (i32, i32) {
    %c0_i32 = arith.constant 0 : i32
    %c0_i32_0 = arith.constant 0 : i32
    return %arg0, %c0_i32 : i32, i32
  }
  func.func @transform_2(%arg0: i32, %arg1: i32) -> (i32, i32) {
    %c0_i32 = arith.constant 0 : i32
    %c0_i32_0 = arith.constant 0 : i32
    %c0_i32_1 = arith.constant 0 : i32
    return %c0_i32, %c0_i32_0 : i32, i32
  }
  func.func @transform_3(%arg0: i32, %arg1: i32) -> (i32, i32) {
    %c0_i32 = arith.constant 0 : i32
    %c0_i32_0 = arith.constant 0 : i32
    %c0_i32_1 = arith.constant 0 : i32
    return %c0_i32, %c0_i32_0 : i32, i32
  }
  func.func @transform_4(%arg0: i32, %arg1: i32) -> (i32, i32) {
    %c0_i32 = arith.constant 0 : i32
    %c0_i32_0 = arith.constant 0 : i32
    %c0_i32_1 = arith.constant 0 : i32
    return %c0_i32, %c0_i32_0 : i32, i32
  }
  func.func @transform_5(%arg0: i32, %arg1: i32) -> (i32, i32) {
    %c0_i32 = arith.constant 0 : i32
    %c0_i32_0 = arith.constant 0 : i32
    %c0_i32_1 = arith.constant 0 : i32
    return %c0_i32, %c0_i32_0 : i32, i32
  }
  func.func @transform_6(%arg0: i32, %arg1: i32) -> (i32, i32, i32) {
    %c0_i32 = arith.constant 0 : i32
    %c0_i32_0 = arith.constant 0 : i32
    return %arg1, %arg0, %c0_i32 : i32, i32, i32
  }
}

</mosaic_0001>

<bundles_post_ra>
// kernel: tpu_custom_call.1
= control target key start
LH: loop header
LB: loop body
LE: loop exit
PB: predicated region body
PF: predicated region fallthrough
CT: control target
= control target key end

     0   :  { %vm45_vm0 = vcmask 261120   ;;  %vm114_vm1 = vcmask 130048   ;;  %s2574_s0 = inlined_call_operand.vmem [shape: f32[1,128,16], index: 0, kind: input, shape index: {}]   ;;  %s2575_s1 = inlined_call_operand.vmem [shape: f32[128,32], index: 1, kind: input, shape index: {}]   ;;  %s2576_s2 = inlined_call_operand.vmem [shape: bf16[16,32], index: 2, kind: input, shape index: {}]   ;;  %s2577_s3 = inlined_call_operand.vmem [shape: f32[64,128], index: 3, kind: input, shape index: {}]   ;;  %s2578_s4 = inlined_call_operand.vmem [shape: bf16[32,96], index: 4, kind: input, shape index: {}]   ;;  %s2579_s5 = inlined_call_operand.vmem [shape: f32[8,128], index: 5, kind: input, shape index: {}]   ;;  %s2580_s6 = inlined_call_operand.hbm [shape: f32[1,128,128], index: 6, kind: output, shape index: {}]  }
   0x1   :  { %v1408_v0 = vld [vmem:[%s2576_s2] sm:$0xff]  ;;  %v63_v2 = vld [vmem:[%s2574_s0 + $0x8] sm:$0xff]  ;;  %v31_v6 = vld [vmem:[%s2575_s1 + $0x10] sm:$0xff] }
   0x2   :  { %v62_v1 = vld [vmem:[%s2574_s0] sm:$0xff]  ;;  %146 = vmatpush.bf16.msra.mxu0 %v1408_v0  ;;  %v30_v5 = vld [vmem:[%s2575_s1 + $0x8] sm:$0xff]  ;;  %1411 = vmatpush.bf16.msra.mxu3 %v1408_v0  ;;  %v32_v7 = vld [vmem:[%s2575_s1 + $0x18] sm:$0xff]  ;;  %48 = vst.msk [vmem:[#allocation2 + $0x10] sm:$0xff] %vm45_vm0, %v31_v6 }
   0x3   :  { %v97_v3 = vpack.c.bf16 %v63_v2, %v62_v1  ;;  %v29_v4 = vld [vmem:[%s2575_s1] sm:$0xff]  ;;  %47 = vst.msk [vmem:[#allocation2 + $0x8] sm:$0xff] %vm45_vm0, %v30_v5 }
   0x4   :  { %46 = vst.msk [vmem:[#allocation2] sm:$0xff] %vm45_vm0, %v29_v4 }
   0x5   :  { %1352 = vmatmul.msk.bf16.vlgmr.msra.gmra.mxu0 %vm114_vm1, %v97_v3  ;;  %49 = vst.msk [vmem:[#allocation2 + $0x18] sm:$0xff] %vm45_vm0, %v32_v7 }
   0x6   :  { %11 = vsyncpa [#allocation4], 0  ;;  %s1585_s10 = smov 32   ;;  %v64_v10 = vld [vmem:[%s2574_s0 + $0x10] sm:$0xff]  ;;  %v65_v11 = vld [vmem:[%s2574_s0 + $0x18] sm:$0xff]  ;;  %vm294_vm2 = vcmask 523264  }
   0x7   :  { %v98_v13 = vpack.c.bf16 %v65_v11, %v64_v10  ;;  %v35_v15 = vld [vmem:[%s2575_s1 + $0x30] sm:$0xff]  ;;  %v66_v17 = vld [vmem:[%s2574_s0 + $0x20] sm:$0xff]  ;;  %v67_v18 = vld [vmem:[%s2574_s0 + $0x28] sm:$0xff]  ;;  %s1586_s7 = smov 64   ;;  %s1587_s8 = smov 96  }
   0x8   :  { %52 = vst.msk [vmem:[#allocation2 + $0x30] sm:$0xff] %vm45_vm0, %v35_v15  ;;  %v99_v19 = vpack.c.bf16 %v67_v18, %v66_v17  ;;  %v33_v20 = vld [vmem:[%s2575_s1 + $0x20] sm:$0xff]  ;;  %v36_v21 = vld [vmem:[%s2575_s1 + $0x38] sm:$0xff]  ;;  %v34_v22 = vld [vmem:[%s2575_s1 + $0x28] sm:$0xff]  ;;  %s1336_s17 = sshll.u32 %s2580_s6, 4  ;;  %s1589_s18 = smov 128   ;;  %s1337_s17 = int_to_ptr.hbm [resolvable:$true] %s1336_s17 }
   0x9   :  { %v80_v9 = vld [vmem:[#allocation2 + $0x10] sm:$0xff]  ;;  %50 = vst.msk [vmem:[#allocation2 + $0x20] sm:$0xff] %vm45_vm0, %v33_v20  ;;  %v37_v23 = vld [vmem:[%s2575_s1 + $0x40] sm:$0xff]  ;;  %v69_v27 = vld [vmem:[%s2574_s0 + $0x38] sm:$0xff]  ;;  %s1590_s19 = smov 8  }
   0xa   :  { %224 = vrot.lane.b32.xlu1 %v80_v9, %s1585_s10  ;;  %v79_v12 = vld [vmem:[#allocation2 + $0x8] sm:$0xff]  ;;  %53 = vst.msk [vmem:[#allocation2 + $0x38] sm:$0xff] %vm45_vm0, %v36_v21  ;;  %v68_v26 = vld [vmem:[%s2574_s0 + $0x30] sm:$0xff]  ;;  %v70_v35 = vld [vmem:[%s2574_s0 + $0x40] sm:$0xff] }
   0xb   :  { %v78_v8 = vld [vmem:[#allocation2] sm:$0xff]  ;;  %51 = vst.msk [vmem:[#allocation2 + $0x28] sm:$0xff] %vm45_vm0, %v34_v22  ;;  %v100_v29 = vpack.c.bf16 %v69_v27, %v68_v26  ;;  %v42_v31 = vld [vmem:[%s2575_s1 + $0x68] sm:$0xff]  ;;  %v39_v32 = vld [vmem:[%s2575_s1 + $0x50] sm:$0xff] }
   0xc   :  { %220 = vrot.lane.b32.xlu0 %v78_v8, %s1585_s10  ;;  %v81_v14 = vld [vmem:[#allocation2 + $0x18] sm:$0xff]  ;;  %54 = vst.msk [vmem:[#allocation2 + $0x40] sm:$0xff] %vm45_vm0, %v37_v23  ;;  %v43_v33 = vld [vmem:[%s2575_s1 + $0x70] sm:$0xff]  ;;  %v71_v36 = vld [vmem:[%s2574_s0 + $0x48] sm:$0xff] }
   0xd   :  { %59 = vst.msk [vmem:[#allocation2 + $0x68] sm:$0xff] %vm45_vm0, %v42_v31  ;;  %v101_v38 = vpack.c.bf16 %v71_v36, %v70_v35  ;;  %v41_v40 = vld [vmem:[%s2575_s1 + $0x60] sm:$0xff]  ;;  %v40_v41 = vld [vmem:[%s2575_s1 + $0x58] sm:$0xff]  ;;  %v76_v42 = vld [vmem:[%s2574_s0 + $0x70] sm:$0xff] }
   0xe   :  { %56 = vst.msk [vmem:[#allocation2 + $0x50] sm:$0xff] %vm45_vm0, %v39_v32  ;;  %v77_v43 = vld [vmem:[%s2574_s0 + $0x78] sm:$0xff]  ;;  %v38_v44 = vld [vmem:[%s2575_s1 + $0x48] sm:$0xff]  ;;  %v291_v47 = vld [vmem:[%s2577_s3 + $0x30] sm:$0xff] }
   0xf   :  { %v84_v16 = vld [vmem:[#allocation2 + $0x30] sm:$0xff]  ;;  %60 = vst.msk [vmem:[#allocation2 + $0x70] sm:$0xff] %vm45_vm0, %v43_v33  ;;  %v104_v45 = vpack.c.bf16 %v77_v43, %v76_v42  ;;  %v292_v46 = vld [vmem:[%s2577_s3 + $0x38] sm:$0xff]  ;;  %v290_v48 = vld [vmem:[%s2577_s3 + $0x28] sm:$0xff] }
  0x10   :  { %v82_v24 = vld [vmem:[#allocation2 + $0x20] sm:$0xff]  ;;  %58 = vst.msk [vmem:[#allocation2 + $0x60] sm:$0xff] %vm45_vm0, %v41_v40  ;;  %351 = vmatpush.msra.mxu1 %v292_v46  ;;  %1412 = vmatpush.msrb.mxu3 %v292_v46  ;;  %v288_v52 = vld [vmem:[%s2577_s3 + $0x18] sm:$0xff]  ;;  %v72_v53 = vld [vmem:[%s2574_s0 + $0x50] sm:$0xff] }
  0x11   :  { %228 = vrot.lane.b32.xlu2 %v82_v24, %s1585_s10  ;;  %v85_v25 = vld [vmem:[#allocation2 + $0x38] sm:$0xff]  ;;  %57 = vst.msk [vmem:[#allocation2 + $0x58] sm:$0xff] %vm45_vm0, %v40_v41  ;;  %1359 = vmatmul.msk.bf16.vlgmr.msra.gmra.mxu3 %vm114_vm1, %v104_v45  ;;  %v289_v49 = vld [vmem:[%s2577_s3 + $0x20] sm:$0xff]  ;;  %v75_v58 = vld [vmem:[%s2574_s0 + $0x68] sm:$0xff] }
  0x12   :  { %226 = vrot.lane.b32.xlu1 %v81_v14, %s1585_s10  ;;  %v83_v30 = vld [vmem:[#allocation2 + $0x28] sm:$0xff]  ;;  %55 = vst.msk [vmem:[#allocation2 + $0x48] sm:$0xff] %vm45_vm0, %v38_v44  ;;  %352 = vmatpush.msra.mxu1 %v291_v47  ;;  %v73_v54 = vld [vmem:[%s2574_s0 + $0x58] sm:$0xff]  ;;  %v74_v57 = vld [vmem:[%s2574_s0 + $0x60] sm:$0xff] }
  0x13   :  { %v86_v28 = vld [vmem:[#allocation2 + $0x40] sm:$0xff]  ;;  %1413 = vmatpush.msrb.mxu3 %v291_v47  ;;  %v102_v55 = vpack.c.bf16 %v73_v54, %v72_v53  ;;  %v103_v59 = vpack.c.bf16 %v75_v58, %v74_v57  ;;  %v287_v60 = vld [vmem:[%s2577_s3 + $0x10] sm:$0xff]  ;;  %v286_v61 = vld [vmem:[%s2577_s3 + $0x8] sm:$0xff] }
  0x14   :  { %222 = vrot.lane.b32.xlu0 %v79_v12, %s1585_s10  ;;  %v91_v34 = vld [vmem:[#allocation2 + $0x68] sm:$0xff]  ;;  %353 = vmatpush.msra.mxu1 %v290_v48  ;;  %v285_v62 = vld [vmem:[%s2577_s3] sm:$0xff]  ;;  %v44_v63 = vld [vmem:[%s2575_s1 + $0x78] sm:$0xff] }
  0x15   :  { %1353 = vmatmul.msk.bf16.gmra.mxu0 %vm114_vm1, %v98_v13  ;;  %v88_v39 = vld [vmem:[#allocation2 + $0x50] sm:$0xff]  ;;  %1414 = vmatpush.msrb.mxu3 %v290_v48  ;;  %61 = vst.msk [vmem:[#allocation2 + $0x78] sm:$0xff] %vm45_vm0, %v44_v63  ;;  %v1791_v0 = vld [vmem:[%s2579_s5] ss:$0 sm:$0xff] }
  0x16   :  { %v92_v37 = vld [vmem:[#allocation2 + $0x70] sm:$0xff]  ;;  %354 = vmatpush.msra.mxu1 %v289_v49 }
  0x17   :  { %v90_v50 = vld [vmem:[#allocation2 + $0x60] sm:$0xff]  ;;  %1415 = vmatpush.msrb.mxu3 %v289_v49 }
  0x18   :  { %v89_v51 = vld [vmem:[#allocation2 + $0x58] sm:$0xff]  ;;  %355 = vmatpush.msra.mxu1 %v288_v52 }
  0x19   :  { %230 = vrot.lane.b32.xlu2 %v83_v30, %s1585_s10  ;;  %1416 = vmatpush.msrb.mxu3 %v288_v52  ;;  %v87_v56 = vld [vmem:[#allocation2 + $0x48] sm:$0xff] }
  0x1a   :  { %234 = vrot.lane.b32.xlu1 %v85_v25, %s1585_s10  ;;  %356 = vmatpush.msra.mxu1 %v287_v60 }
  0x1b   :  { %1417 = vmatpush.msrb.mxu3 %v287_v60 }
  0x1c   :  { %232 = vrot.lane.b32.xlu0 %v84_v16, %s1585_s10  ;;  %357 = vmatpush.msra.mxu1 %v286_v61  ;;  %v93_v4 = vld [vmem:[#allocation2 + $0x78] sm:$0xff] }
  0x1d   :  { %1418 = vmatpush.msrb.mxu3 %v286_v61 }
  0x1e   :  { %358 = vmatpush.msra.mxu1 %v285_v62 }
  0x1f   :  { %1419 = vmatpush.msrb.mxu3 %v285_v62 }
  0x21   :  { %244 = vrot.lane.b32.xlu2 %v90_v50, %s1585_s10 }
  0x22   :  { %246 = vrot.lane.b32.xlu1 %v91_v34, %s1585_s10 }
  0x24   :  { %236 = vrot.lane.b32.xlu0 %v86_v28, %s1585_s10 }
  0x25   :  { %1354 = vmatmul.msk.bf16.gmra.mxu0 %vm114_vm1, %v99_v19 }
  0x29   :  { %238 = vrot.lane.b32.xlu2 %v87_v56, %s1585_s10 }
  0x2a   :  { %240 = vrot.lane.b32.xlu1 %v88_v39, %s1585_s10 }
  0x2c   :  { %248 = vrot.lane.b32.xlu0 %v92_v37, %s1585_s10 }
  0x31   :  { %250 = vrot.lane.b32.xlu2 %v93_v4, %s1585_s10 }
  0x34   :  { %242 = vrot.lane.b32.xlu0 %v89_v51, %s1585_s10 }
  0x35   :  { %1355 = vmatmul.msk.bf16.gmra.mxu0 %vm114_vm1, %v100_v29 }
  0x45   :  { %1356 = vmatmul.msk.bf16.gmra.mxu0 %vm114_vm1, %v101_v38 }
  0x55   :  { %1357 = vmatmul.msk.bf16.gmra.mxu0 %vm114_vm1, %v102_v55 }
  0x65   :  { %1358 = vmatmul.msk.bf16.gmra.mxu0 %vm114_vm1, %v103_v59 }
  0x6b   :  { %v1818_v23 = vpop.permute.xlu2 %228 }
  0x73   :  { %v1825_v29 = vpop.permute.xlu2 %230 }
  0x7b   :  { %v1842_v43 = vpop.permute.xlu2 %244 }
  0x7c   :  { %v1806_v13 = vpop.permute.xlu1 %224  ;;  %2587 = vst [vmem:[#allocation6_spill] sm:$0xff] %v1842_v43 }
  0x7e   :  { %v1793_v2 = vpop.permute.xlu0 %220 }
  0x82   :  { %v148_v1 = vpop.f32.mrf.mxu0 }
  0x83   :  { %v149_v3 = vadd.f32 %v1791_v0, %v148_v1  ;;  %v1853_v51 = vpop.permute.xlu2 %238 }
  0x84   :  { %v1813_v19 = vpop.permute.xlu1 %226 }
  0x85   :  { %v188_v5 = vmax.f32 %v149_v3, 0.0 }
  0x86   :  { %v1801_v9 = vpop.permute.xlu0 %222 }
  0x87   :  { %v269_v6 = vsel %vm45_vm0, %v188_v5, %v1793_v2 }
  0x88   :  { %1360 = vmatmul.msk.f32.vlgmr.msra.gmra.mxu1 %vm294_vm2, %v269_v6 }
  0x8a   :  { %v150_v7 = vpop.f32.mrf.mxu0 }
  0x8b   :  { %v151_v8 = vadd.f32 %v1791_v0, %v150_v7 }
  0x8c   :  { %v1837_v39 = vpop.permute.xlu1 %234 }
  0x8d   :  { %v189_v10 = vmax.f32 %v151_v8, 0.0 }
  0x8e   :  { %v1831_v34 = vpop.permute.xlu0 %232 }
  0x8f   :  { %v270_v11 = vsel %vm45_vm0, %v189_v10, %v1801_v9 }
  0x90   :  { %1361 = vmatmul.msk.f32.gmra.mxu1 %vm294_vm2, %v270_v11 }
  0x92   :  { %v153_v12 = vpop.f32.mrf.mxu0 }
  0x93   :  { %v154_v14 = vadd.f32 %v1791_v0, %v153_v12 }
  0x94   :  { %v1850_v49 = vpop.permute.xlu1 %246  ;;  %v183_v7 = vpop.f32.mrf.mxu3 }
  0x95   :  { %v190_v15 = vmax.f32 %v154_v14, 0.0  ;;  %2588 = vst [vmem:[#allocation7_spill] sm:$0xff] %v1850_v49  ;;  %v184_v12 = vadd.f32 %v1791_v0, %v183_v7 }
  0x96   :  { %v1845_v45 = vpop.permute.xlu0 %236 }
  0x97   :  { %v271_v16 = vsel %vm45_vm0, %v190_v15, %v1806_v13  ;;  %v202_v15 = vmax.f32 %v184_v12, 0.0 }
  0x98   :  { %1362 = vmatmul.msk.f32.gmra.mxu1 %vm294_vm2, %v271_v16 }
  0x9a   :  { %v155_v17 = vpop.f32.mrf.mxu0 }
  0x9b   :  { %v156_v18 = vadd.f32 %v1791_v0, %v155_v17 }
  0x9c   :  { %v1861_v57 = vpop.permute.xlu1 %240  ;;  %v185_v16 = vpop.f32.mrf.mxu3 }
  0x9d   :  { %v191_v20 = vmax.f32 %v156_v18, 0.0  ;;  %2590 = vst [vmem:[#allocation9_spill] sm:$0xff] %v1861_v57  ;;  %v186_v18 = vadd.f32 %v1791_v0, %v185_v16 }
  0x9e   :  { %v1858_v55 = vpop.permute.xlu0 %248 }
  0x9f   :  { %v272_v21 = vsel %vm45_vm0, %v191_v20, %v1813_v19  ;;  %2589 = vst [vmem:[#allocation8_spill] sm:$0xff] %v1858_v55  ;;  %v283_v17 = vsel %vm45_vm0, %v202_v15, %v1858_v55  ;;  %v203_v20 = vmax.f32 %v186_v18, 0.0 }
  0xa0   :  { %1363 = vmatmul.msk.f32.gmra.mxu1 %vm294_vm2, %v272_v21  ;;  %v1885_v21 = vpop.permute.xlu2 %250 }
  0xa1   :  { %2592 = vst [vmem:[#allocation11_spill] sm:$0xff] %v1885_v21 }
  0xa2   :  { %v158_v22 = vpop.f32.mrf.mxu0 }
  0xa3   :  { %v159_v24 = vadd.f32 %v1791_v0, %v158_v22  ;;  %v284_v22 = vsel %vm45_vm0, %v203_v20, %v1885_v21 }
  0xa5   :  { %v192_v25 = vmax.f32 %v159_v24, 0.0  ;;  %v1893_v24 = vld [vmem:[%s2579_s5 + $0x1] ss:$0 sm:$0xff] }
  0xa6   :  { %v1867_v62 = vpop.permute.xlu0 %242 }
  0xa7   :  { %v273_v26 = vsel %vm45_vm0, %v192_v25, %v1818_v23  ;;  %2591 = vst [vmem:[#allocation10_spill] sm:$0xff] %v1867_v62 }
  0xa8   :  { %1364 = vmatmul.msk.f32.gmra.mxu1 %vm294_vm2, %v273_v26 }
  0xaa   :  { %v160_v27 = vpop.f32.mrf.mxu0 }
  0xab   :  { %v161_v28 = vadd.f32 %v1791_v0, %v160_v27 }
  0xad   :  { %v193_v30 = vmax.f32 %v161_v28, 0.0 }
  0xaf   :  { %v274_v31 = vsel %vm45_vm0, %v193_v30, %v1825_v29 }
  0xb0   :  { %1365 = vmatmul.msk.f32.gmra.mxu1 %vm294_vm2, %v274_v31 }
  0xb2   :  { %v163_v32 = vpop.f32.mrf.mxu0 }
  0xb3   :  { %v164_v33 = vadd.f32 %v1791_v0, %v163_v32 }
  0xb5   :  { %v194_v35 = vmax.f32 %v164_v33, 0.0 }
  0xb7   :  { %v275_v36 = vsel %vm45_vm0, %v194_v35, %v1831_v34 }
  0xb8   :  { %1366 = vmatmul.msk.f32.gmra.mxu1 %vm294_vm2, %v275_v36 }
  0xba   :  { %v165_v37 = vpop.f32.mrf.mxu0 }
  0xbb   :  { %v166_v38 = vadd.f32 %v1791_v0, %v165_v37 }
  0xbd   :  { %v195_v40 = vmax.f32 %v166_v38, 0.0 }
  0xbf   :  { %v276_v41 = vsel %vm45_vm0, %v195_v40, %v1837_v39 }
  0xc0   :  { %1367 = vmatmul.msk.f32.gmra.mxu1 %vm294_vm2, %v276_v41 }
  0xc2   :  { %v168_v42 = vpop.f32.mrf.mxu0 }
  0xc3   :  { %v169_v44 = vadd.f32 %v1791_v0, %v168_v42 }
  0xc5   :  { %v196_v46 = vmax.f32 %v169_v44, 0.0 }
  0xc7   :  { %v277_v47 = vsel %vm45_vm0, %v196_v46, %v1845_v45 }
  0xc8   :  { %1368 = vmatmul.msk.f32.gmra.mxu1 %vm294_vm2, %v277_v47 }
  0xca   :  { %v170_v48 = vpop.f32.mrf.mxu0 }
  0xcb   :  { %v171_v50 = vadd.f32 %v1791_v0, %v170_v48 }
  0xcd   :  { %v197_v52 = vmax.f32 %v171_v50, 0.0 }
  0xcf   :  { %v278_v53 = vsel %vm45_vm0, %v197_v52, %v1853_v51 }
  0xd0   :  { %1369 = vmatmul.msk.f32.gmra.mxu1 %vm294_vm2, %v278_v53 }
  0xd2   :  { %v173_v54 = vpop.f32.mrf.mxu0 }
  0xd3   :  { %v174_v56 = vadd.f32 %v1791_v0, %v173_v54 }
  0xd5   :  { %v198_v58 = vmax.f32 %v174_v56, 0.0 }
  0xd7   :  { %v279_v59 = vsel %vm45_vm0, %v198_v58, %v1861_v57 }
  0xd8   :  { %1370 = vmatmul.msk.f32.gmra.mxu1 %vm294_vm2, %v279_v59 }
  0xda   :  { %v175_v60 = vpop.f32.mrf.mxu0 }
  0xdb   :  { %v176_v61 = vadd.f32 %v1791_v0, %v175_v60 }
  0xdd   :  { %v199_v63 = vmax.f32 %v176_v61, 0.0 }
  0xdf   :  { %v280_v1 = vsel %vm45_vm0, %v199_v63, %v1867_v62 }
  0xe0   :  { %1371 = vmatmul.msk.f32.gmra.mxu1 %vm294_vm2, %v280_v1 }
  0xe2   :  { %v178_v3 = vpop.f32.mrf.mxu0 }
  0xe3   :  { %v179_v4 = vadd.f32 %v1791_v0, %v178_v3 }
  0xe5   :  { %v200_v5 = vmax.f32 %v179_v4, 0.0 }
  0xe7   :  { %v281_v6 = vsel %vm45_vm0, %v200_v5, %v1842_v43 }
  0xe8   :  { %1372 = vmatmul.msk.f32.vlgmr.msrb.gmra.mxu3 %vm294_vm2, %v281_v6 }
  0xea   :  { %v180_v8 = vpop.f32.mrf.mxu0 }
  0xeb   :  { %v181_v10 = vadd.f32 %v1791_v0, %v180_v8 }
  0xed   :  { %v201_v11 = vmax.f32 %v181_v10, 0.0 }
  0xef   :  { %v282_v14 = vsel %vm45_vm0, %v201_v11, %v1850_v49 }
  0xf0   :  { %1373 = vmatmul.msk.f32.gmra.mxu3 %vm294_vm2, %v282_v14 }
  0xf8   :  { %1374 = vmatmul.msk.f32.gmra.mxu3 %vm294_vm2, %v283_v17 }
 0x100   :  { %1375 = vmatmul.msk.f32.gmra.mxu3 %vm294_vm2, %v284_v22 }
 0x105   :  { %v360_v25 = vpop.f32.mrf.mxu1 }
 0x106   :  { %v1896_v26 = vadd.f32 %v1893_v24, %v360_v25 }
 0x108   :  { %728 = vrot.lane.b32.xlu1 %v1896_v26, %s1585_s10  ;;  %v1376_v46 = vmul.f32 -1.442695, %v1896_v26 }
 0x10d   :  { %v363_v0 = vpop.f32.mrf.mxu1 }
 0x10e   :  { %v1901_v27 = vadd.f32 %v1893_v24, %v363_v0 }
 0x110   :  { %730 = vrot.lane.b32.xlu2 %v1901_v27, %s1585_s10  ;;  %v1377_v41 = vmul.f32 -1.442695, %v1901_v27 }
 0x112   :  { %1431 = vpow2.f32 %v1377_v41 }
 0x115   :  { %v366_v28 = vpop.f32.mrf.mxu1 }
 0x116   :  { %v1906_v30 = vadd.f32 %v1893_v24, %v366_v28 }
 0x118   :  { %732 = vrot.lane.b32.xlu0 %v1906_v30, %s1585_s10  ;;  %v1432_v42 = vpop.eup %1431  ;;  %v1378_v56 = vmul.f32 -1.442695, %v1906_v30 }
 0x119   :  { %v457_v44 = vadd.f32 1.0, %v1432_v42 }
 0x11b   :  { %1433 = vrcp.f32 %v457_v44  ;;  %v498_v61 = vand.u32 2147483648, %v457_v44  ;;  %vm492_vm4 = vweird.f32 %v457_v44  ;;  %v496_v1 = vand.u32 2147483647, %v457_v44 }
 0x11c   :  { %1435 = vpow2.f32 %v1376_v46 }
 0x11d   :  { %v369_v31 = vpop.f32.mrf.mxu1  ;;  %v499_v7 = vor.u32 1.1754944e-38, %v498_v61  ;;  %vm497_vm6 = vcmp.eq.f32.partialorder %v496_v1, 8.507059e+37 }
 0x11e   :  { %v1911_v32 = vadd.f32 %v1893_v24, %v369_v31 }
 0x120   :  { %734 = vrot.lane.b32.xlu1 %v1911_v32, %s1585_s10  ;;  %v1379_v63 = vmul.f32 -1.442695, %v1911_v32 }
 0x121   :  { %v1434_v47 = vpop.eup %1433 }
 0x122   :  { %v1436_v48 = vpop.eup %1435  ;;  %v488_v50 = vmul.f32 %v1434_v47, %v457_v44  ;;  %vm493_vm3 = vweird.f32 %v1434_v47 }
 0x123   :  { %v456_v52 = vadd.f32 1.0, %v1436_v48  ;;  %vm494_vm5 = vmor %vm492_vm4, %vm493_vm3 }
 0x124   :  { %v489_v53 = vsub.f32 1.0, %v488_v50 }
 0x125   :  { %v372_v33 = vpop.f32.mrf.mxu1  ;;  %1437 = vrcp.f32 %v456_v52  ;;  %v483_v28 = vand.u32 2147483648, %v456_v52  ;;  %vm477_vm8 = vweird.f32 %v456_v52 }
 0x126   :  { %v1916_v35 = vadd.f32 %v1893_v24, %v372_v33  ;;  %v490_v58 = vmul.f32 %v1434_v47, %v489_v53  ;;  %1439 = vpow2.f32 %v1378_v56  ;;  %v481_v33 = vand.u32 2147483647, %v456_v52 }
 0x127   :  { %1441 = vpow2.f32 %v1379_v63  ;;  %v484_v42 = vor.u32 1.1754944e-38, %v483_v28 }
 0x128   :  { %736 = vrot.lane.b32.xlu2 %v1916_v35, %s1585_s10  ;;  %v491_v59 = vadd.f32 %v1434_v47, %v490_v58  ;;  %v1380_v15 = vmul.f32 -1.442695, %v1916_v35  ;;  %vm482_vm10 = vcmp.eq.f32.partialorder %v481_v33, 8.507059e+37 }
 0x12a   :  { %v495_v5 = vsel %vm494_vm5, %v1434_v47, %v491_v59 }
 0x12b   :  { %v1438_v60 = vpop.eup %1437  ;;  %v1940_v11 = vsel %vm497_vm6, %v499_v7, %v495_v5 }
 0x12c   :  { %v1440_v4 = vpop.eup %1439  ;;  %v473_v6 = vmul.f32 %v1438_v60, %v456_v52  ;;  %vm478_vm7 = vweird.f32 %v1438_v60 }
 0x12d   :  { %v375_v36 = vpop.f32.mrf.mxu1  ;;  %v1938_v8 = vadd.f32 1.0, %v1440_v4  ;;  %v1442_v16 = vpop.eup %1441  ;;  %vm479_vm9 = vmor %vm477_vm8, %vm478_vm7 }
 0x12e   :  { %v1921_v37 = vadd.f32 %v1893_v24, %v375_v36  ;;  %v474_v14 = vsub.f32 1.0, %v473_v6  ;;  %v1946_v20 = vadd.f32 1.0, %v1442_v16 }
 0x12f   :  { %1443 = vrcp.f32 %v1938_v8  ;;  %vm507_vm11 = vweird.f32 %v1938_v8  ;;  %v513_v6 = vand.u32 2147483648, %v1938_v8  ;;  %v511_v7 = vand.u32 2147483647, %v1938_v8 }
 0x130   :  { %738 = vrot.lane.b32.xlu0 %v1921_v37, %s1585_s10  ;;  %v475_v17 = vmul.f32 %v1438_v60, %v474_v14  ;;  %1445 = vpow2.f32 %v1380_v15  ;;  %v1381_v31 = vmul.f32 -1.442695, %v1921_v37  ;;  %vm522_vm1 = vweird.f32 %v1946_v20 }
 0x131   :  { %1447 = vrcp.f32 %v1946_v20  ;;  %v514_v16 = vor.u32 1.1754944e-38, %v513_v6  ;;  %vm512_vm14 = vcmp.eq.f32.partialorder %v511_v7, 8.507059e+37 }
 0x132   :  { %v476_v25 = vadd.f32 %v1438_v60, %v475_v17  ;;  %1449 = vpow2.f32 %v1381_v31 }
 0x135   :  { %v378_v38 = vpop.f32.mrf.mxu1  ;;  %v1444_v0 = vpop.eup %1443 }
 0x136   :  { %v1926_v40 = vadd.f32 %v1893_v24, %v378_v38  ;;  %v1446_v36 = vpop.eup %1445  ;;  %v480_v38 = vsel %vm479_vm9, %v1438_v60, %v476_v25  ;;  %v503_v41 = vmul.f32 %v1444_v0, %v1938_v8  ;;  %vm508_vm12 = vweird.f32 %v1444_v0 }
 0x137   :  { %v1956_v44 = vadd.f32 1.0, %v1446_v36  ;;  %v1958_v47 = vsel %vm482_vm10, %v484_v42, %v480_v38  ;;  %v1448_v53 = vpop.eup %1447  ;;  %vm509_vm13 = vmor %vm507_vm11, %vm508_vm12 }
 0x138   :  { %740 = vrot.lane.b32.xlu0 %v1926_v40, %s1585_s10  ;;  %v504_v50 = vsub.f32 1.0, %v503_v41  ;;  %v1382_v52 = vmul.f32 -1.442695, %v1926_v40  ;;  %v1450_v56 = vpop.eup %1449  ;;  %v518_v59 = vmul.f32 %v1448_v53, %v1946_v20  ;;  %vm523_vm15 = vweird.f32 %v1448_v53 }
 0x139   :  { %1451 = vrcp.f32 %v1956_v44  ;;  %v1965_v60 = vadd.f32 1.0, %v1450_v56  ;;  %v526_v41 = vand.u32 2147483647, %v1946_v20  ;;  %vm524_vm2 = vmor %vm522_vm1, %vm523_vm15  ;;  %vm537_vm3 = vweird.f32 %v1956_v44 }
 0x13a   :  { %v505_v58 = vmul.f32 %v1444_v0, %v504_v50  ;;  %1453 = vpow2.f32 %v1382_v52  ;;  %v519_v4 = vsub.f32 1.0, %v518_v59  ;;  %v541_v52 = vand.u32 2147483647, %v1956_v44 }
 0x13b   :  { %1455 = vrcp.f32 %v1965_v60  ;;  %vm527_vm5 = vcmp.eq.f32.partialorder %v526_v41, 8.507059e+37  ;;  %v543_v56 = vand.u32 2147483648, %v1956_v44  ;;  %vm552_vm8 = vweird.f32 %v1965_v60 }
 0x13c   :  { %v506_v1 = vadd.f32 %v1444_v0, %v505_v58  ;;  %v520_v15 = vmul.f32 %v1448_v53, %v519_v4  ;;  %vm542_vm7 = vcmp.eq.f32.partialorder %v541_v52, 8.507059e+37 }
 0x13d   :  { %v1932_v54 = vpop.f32.mrf.mxu1 }
 0x13e   :  { %v1972_v63 = vadd.f32 %v1893_v24, %v1932_v54  ;;  %v510_v14 = vsel %vm509_vm13, %v1444_v0, %v506_v1  ;;  %v521_v33 = vadd.f32 %v1448_v53, %v520_v15  ;;  %v528_v0 = vand.u32 2147483648, %v1946_v20 }
 0x13f   :  { %v1974_v5 = vpop.eup %1451 }
 0x140   :  { %v533_v54 = vmul.f32 %v1974_v5, %v1956_v44  ;;  %v525_v42 = vsel %vm524_vm2, %v1448_v53, %v521_v33  ;;  %vm538_vm4 = vweird.f32 %v1974_v5 }
 0x141   :  { %vm539_vm6 = vmor %vm537_vm3, %vm538_vm4 }
 0x142   :  { %v534_v28 = vsub.f32 1.0, %v533_v54 }
 0x145   :  { %v1936_v3 = vpop.f32.mrf.mxu1 }
 0x146   :  { %v1989_v8 = vadd.f32 %v1893_v24, %v1936_v3  ;;  %v535_v3 = vmul.f32 %v1974_v5, %v534_v28  ;;  %v556_v28 = vand.u32 2147483647, %v1965_v60 }
 0x148   :  { %v536_v53 = vadd.f32 %v1974_v5, %v535_v3  ;;  %vm557_vm11 = vcmp.eq.f32.partialorder %v556_v28, 8.507059e+37 }
 0x14a   :  { %v540_v54 = vsel %vm539_vm6, %v1974_v5, %v536_v53 }
 0x14d   :  { %v387_v18 = vpop.f32.mrf.mxu1 }
 0x14e   :  { %v1949_v22 = vadd.f32 %v1893_v24, %v387_v18  ;;  %v1985_v18 = vsel %vm512_vm14, %v514_v16, %v510_v14 }
 0x16a   :  { %v731_v10 = vpop.permute.xlu2 %730 }
 0x16b   :  { %v777_v12 = vmul.f32 %v731_v10, %v1940_v11  ;;  %v1967_v61 = vpop.f32.mrf.mxu3  ;;  %v1454_v10 = vpop.eup %1453 }
 0x16c   :  { %v1983_v17 = vadd.f32 1.0, %v1454_v10  ;;  %v1456_v36 = vpop.eup %1455  ;;  %v544_v10 = vor.u32 1.1754944e-38, %v543_v56  ;;  %v2032_v5 = vadd.f32 %v1893_v24, %v1967_v61 }
 0x16d   :  { %810 = vrot.lane.b32.xlu2 %v777_v12, %s1586_s7  ;;  %v390_v12 = vpop.f32.mrf.mxu1  ;;  %vm553_vm9 = vweird.f32 %v1456_v36 }
 0x16e   :  { %1457 = vrcp.f32 %v1983_v17  ;;  %v2028_v33 = vadd.f32 %v1893_v24, %v390_v12  ;;  %vm554_vm10 = vmor %vm552_vm8, %vm553_vm9  ;;  %vm567_vm12 = vweird.f32 %v1983_v17 }
 0x173   :  { %v399_v38 = vpop.f32.mrf.mxu3 }
 0x174   :  { %v2008_v59 = vadd.f32 %v1893_v24, %v399_v38  ;;  %v1458_v6 = vpop.eup %1457 }
 0x175   :  { %746 = vrot.lane.b32.xlu2 %v1949_v22, %s1585_s10  ;;  %v393_v50 = vpop.f32.mrf.mxu1  ;;  %v563_v15 = vmul.f32 %v1458_v6, %v1983_v17  ;;  %vm568_vm13 = vweird.f32 %v1458_v6 }
 0x176   :  { %v2013_v7 = vadd.f32 %v1893_v24, %v393_v50  ;;  %vm569_vm14 = vmor %vm567_vm12, %vm568_vm13 }
 0x17a   :  { %v729_v46 = vpop.permute.xlu1 %728 }
 0x17b   :  { %v776_v48 = vmul.f32 %v729_v46, %v1958_v47  ;;  %v548_v46 = vmul.f32 %v1456_v36, %v1965_v60  ;;  %v402_v44 = vpop.f32.mrf.mxu3 }
 0x17d   :  { %808 = vrot.lane.b32.xlu1 %v776_v48, %s1586_s7  ;;  %v529_v48 = vor.u32 1.1754944e-38, %v528_v0  ;;  %v549_v4 = vsub.f32 1.0, %v548_v46  ;;  %v564_v0 = vsub.f32 1.0, %v563_v15  ;;  %v1383_v15 = vmul.f32 -1.442695, %v1972_v63 }
 0x17f   :  { %v2005_v58 = vsel %vm527_vm5, %v529_v48, %v525_v42  ;;  %v550_v14 = vmul.f32 %v1456_v36, %v549_v4  ;;  %v565_v3 = vmul.f32 %v1458_v6, %v564_v0  ;;  %v573_v48 = vand.u32 2147483648, %v1983_v17 }
 0x181   :  { %v551_v38 = vadd.f32 %v1456_v36, %v550_v14  ;;  %v566_v56 = vadd.f32 %v1458_v6, %v565_v3 }
 0x182   :  { %v737_v16 = vpop.permute.xlu2 %736 }
 0x183   :  { %v555_v12 = vsel %vm554_vm10, %v1456_v36, %v551_v38  ;;  %v405_v42 = vpop.f32.mrf.mxu3  ;;  %v574_v36 = vor.u32 1.1754944e-38, %v573_v48  ;;  %v570_v53 = vsel %vm569_vm14, %v1458_v6, %v566_v56  ;;  %v1384_v6 = vmul.f32 -1.442695, %v1989_v8 }
 0x184   :  { %v2045_v50 = vadd.f32 %v1893_v24, %v405_v42  ;;  %v1388_v42 = vmul.f32 -1.442695, %v2032_v5 }
 0x185   :  { %742 = vrot.lane.b32.xlu1 %v1972_v63, %s1585_s10 }
 0x18a   :  { %v733_v25 = vpop.permute.xlu0 %732 }
 0x18b   :  { %v778_v31 = vmul.f32 %v733_v25, %v1985_v18  ;;  %v2023_v25 = vsel %vm542_vm7, %v544_v10, %v540_v54  ;;  %v2055_v10 = vadd.f32 %v1893_v24, %v402_v44  ;;  %v1385_v24 = vmul.f32 -1.442695, %v1949_v22 }
 0x18c   :  { %v780_v41 = vmul.f32 %v737_v16, %v2023_v25 }
 0x18d   :  { %744 = vrot.lane.b32.xlu1 %v1989_v8, %s1585_s10  ;;  %812 = vrot.lane.b32.xlu2 %v778_v31, %s1586_s7  ;;  %v558_v31 = vand.u32 2147483648, %v1965_v60 }
 0x18f   :  { %v559_v60 = vor.u32 1.1754944e-38, %v558_v31 }
 0x191   :  { %v2041_v61 = vsel %vm557_vm11, %v559_v60, %v555_v12  ;;  %v1386_v60 = vmul.f32 -1.442695, %v2028_v33  ;;  %v1387_v12 = vmul.f32 -1.442695, %v2013_v7 }
 0x192   :  { %v735_v20 = vpop.permute.xlu1 %734 }
 0x193   :  { %v779_v1 = vmul.f32 %v735_v20, %v2005_v58  ;;  %v571_v20 = vand.u32 2147483647, %v1983_v17 }
 0x195   :  { %814 = vrot.lane.b32.xlu0 %v779_v1, %s1586_s7  ;;  %754 = vrot.lane.b32.xlu1 %v2008_v59, %s1585_s10  ;;  %vm572_vm15 = vcmp.eq.f32.partialorder %v571_v20, 8.507059e+37 }
 0x196   :  { %750 = vrot.lane.b32.xlu2 %v2013_v7, %s1585_s10  ;;  %v2052_v1 = vsel %vm572_vm15, %v574_v36, %v570_v53 }
 0x19d   :  { %752 = vrot.lane.b32.xlu0 %v2032_v5, %s1585_s10  ;;  %748 = vrot.lane.b32.xlu1 %v2028_v33, %s1585_s10 }
 0x19e   :  { %816 = vrot.lane.b32.xlu2 %v780_v41, %s1586_s7 }
 0x1a2   :  { %v739_v46 = vpop.permute.xlu0 %738 }
 0x1a3   :  { %v781_v52 = vmul.f32 %v739_v46, %v2041_v61 }
 0x1a5   :  { %758 = vrot.lane.b32.xlu1 %v2045_v50, %s1585_s10  ;;  %818 = vrot.lane.b32.xlu0 %v781_v52, %s1586_s7 }
 0x1aa   :  { %v741_v4 = vpop.permute.xlu0 %740 }
 0x1ab   :  { %v782_v54 = vmul.f32 %v741_v4, %v2052_v1 }
 0x1ad   :  { %756 = vrot.lane.b32.xlu0 %v2055_v10, %s1585_s10  ;;  %820 = vrot.lane.b32.xlu2 %v782_v54, %s1586_s7  ;;  %v1391_v54 = vmul.f32 -1.442695, %v2045_v50 }
 0x1c7   :  { %v811_v17 = vpop.permute.xlu2 %810 }
 0x1c8   :  { %v857_v14 = vadd.f32 %v811_v17, %v1901_v27  ;;  %v1389_v27 = vmul.f32 -1.442695, %v2008_v59 }
 0x1ca   :  { %1459 = vtanh.f32 %v857_v14 }
 0x1cb   :  { %1461 = vpow2.f32 %v1383_v15 }
 0x1cc   :  { %1463 = vpow2.f32 %v1384_v6 }
 0x1cd   :  { %1465 = vpow2.f32 %v1385_v24 }
 0x1d0   :  { %v1460_v16 = vpop.eup %1459 }
 0x1d1   :  { %922 = vrot.lane.b32.xlu2 %v1460_v16, %s1587_s8  ;;  %v1462_v44 = vpop.eup %1461 }
 0x1d2   :  { %v463_v28 = vadd.f32 1.0, %v1462_v44  ;;  %v1464_v31 = vpop.eup %1463 }
 0x1d3   :  { %v1466_v38 = vpop.eup %1465  ;;  %v2067_v0 = vadd.f32 1.0, %v1464_v31 }
 0x1d4   :  { %1467 = vrcp.f32 %v463_v28  ;;  %v2069_v41 = vadd.f32 1.0, %v1466_v38  ;;  %vm582_vm1 = vweird.f32 %v463_v28  ;;  %v586_v44 = vand.u32 2147483647, %v463_v28 }
 0x1d5   :  { %1469 = vpow2.f32 %v1389_v27  ;;  %v588_v31 = vand.u32 2147483648, %v463_v28  ;;  %vm597_vm5 = vweird.f32 %v2067_v0 }
 0x1d6   :  { %1471 = vrcp.f32 %v2067_v0  ;;  %vm2110_vm4 = vcmp.eq.f32.partialorder %v586_v44, 8.507059e+37  ;;  %vm612_vm7 = vweird.f32 %v2069_v41  ;;  %v618_v44 = vand.u32 2147483648, %v2069_v41 }
 0x1d7   :  { %1473 = vrcp.f32 %v2069_v41 }
 0x1d8   :  { %1475 = vpow2.f32 %v1386_v60 }
 0x1d9   :  { %1477 = vpow2.f32 %v1387_v12  ;;  %v747_v12 = vpop.permute.xlu2 %746 }
 0x1da   :  { %v2074_v3 = vpop.eup %1467  ;;  %1479 = vpow2.f32 %v1388_v42 }
 0x1db   :  { %v1470_v46 = vpop.eup %1469  ;;  %v578_v48 = vmul.f32 %v2074_v3, %v463_v28  ;;  %vm583_vm2 = vweird.f32 %v2074_v3 }
 0x1dc   :  { %v2079_v52 = vpop.eup %1471  ;;  %v2083_v20 = vadd.f32 1.0, %v1470_v46  ;;  %vm2106_vm3 = vmor %vm582_vm1, %vm583_vm2 }
 0x1dd   :  { %v2081_v56 = vpop.eup %1473  ;;  %v579_v36 = vsub.f32 1.0, %v578_v48  ;;  %v593_v14 = vmul.f32 %v2079_v52, %v2067_v0  ;;  %vm598_vm6 = vweird.f32 %v2079_v52 }
 0x1de   :  { %v1476_v53 = vpop.eup %1475  ;;  %v608_v17 = vmul.f32 %v2081_v56, %v2069_v41  ;;  %1481 = vrcp.f32 %v2083_v20  ;;  %vm613_vm8 = vweird.f32 %v2081_v56  ;;  %vm2135_vm9 = vmor %vm597_vm5, %vm598_vm6  ;;  %vm672_vm13 = vweird.f32 %v2083_v20 }
 0x1df   :  { %v1478_v4 = vpop.eup %1477  ;;  %v2091_v6 = vadd.f32 1.0, %v1476_v53  ;;  %v580_v16 = vmul.f32 %v2074_v3, %v579_v36  ;;  %1483 = vpow2.f32 %v1391_v54  ;;  %v594_v27 = vsub.f32 1.0, %v593_v14  ;;  %vm2145_vm10 = vmor %vm612_vm7, %vm613_vm8 }
 0x1e0   :  { %v1480_v15 = vpop.eup %1479  ;;  %v2094_v24 = vadd.f32 1.0, %v1478_v4  ;;  %v609_v38 = vsub.f32 1.0, %v608_v17  ;;  %v589_v17 = vor.u32 1.1754944e-38, %v588_v31  ;;  %v1390_v14 = vmul.f32 -1.442695, %v2055_v10 }
 0x1e1   :  { %v2097_v60 = vadd.f32 1.0, %v1480_v15  ;;  %1485 = vrcp.f32 %v2091_v6  ;;  %v581_v48 = vadd.f32 %v2074_v3, %v580_v16  ;;  %v601_v31 = vand.u32 2147483647, %v2067_v0 }
 0x1e2   :  { %1487 = vrcp.f32 %v2094_v24  ;;  %v610_v54 = vmul.f32 %v2081_v56, %v609_v38  ;;  %v603_v38 = vand.u32 2147483648, %v2067_v0  ;;  %vm627_vm1 = vweird.f32 %v2091_v6 }
 0x1e3   :  { %v585_v15 = vsel %vm2106_vm3, %v2074_v3, %v581_v48  ;;  %vm602_vm11 = vcmp.eq.f32.partialorder %v601_v31, 8.507059e+37  ;;  %vm657_vm6 = vweird.f32 %v2097_v60 }
 0x1e4   :  { %v2102_v36 = vpop.eup %1481 }
 0x1e5   :  { %v1484_v28 = vpop.eup %1483  ;;  %v668_v16 = vmul.f32 %v2102_v36, %v2083_v20  ;;  %vm673_vm14 = vweird.f32 %v2102_v36 }
 0x1e6   :  { %v2141_v48 = vadd.f32 1.0, %v1484_v28  ;;  %vm2191_vm15 = vmor %vm672_vm13, %vm673_vm14 }
 0x1e7   :  { %v669_v43 = vsub.f32 1.0, %v668_v16 }
 0x1e8   :  { %vm702_vm14 = vweird.f32 %v2141_v48 }
 0x1ef   :  { %v809_v42 = vpop.permute.xlu1 %808 }
 0x1f0   :  { %v856_v46 = vadd.f32 %v809_v42, %v1896_v26  ;;  %v595_v26 = vmul.f32 %v2079_v52, %v594_v27  ;;  %v2130_v27 = vpop.eup %1485  ;;  %v611_v42 = vadd.f32 %v2081_v56, %v610_v54  ;;  %v813_v54 = vpop.permute.xlu2 %812 }
 0x1f1   :  { %v2139_v3 = vpop.eup %1487  ;;  %vm628_vm2 = vweird.f32 %v2130_v27 }
 0x1f2   :  { %1489 = vtanh.f32 %v856_v46  ;;  %v616_v46 = vand.u32 2147483647, %v2069_v41  ;;  %v596_v21 = vadd.f32 %v2079_v52, %v595_v26  ;;  %v2151_v26 = vsel %vm2110_vm4, %v589_v17, %v585_v15  ;;  %vm2229_vm8 = vmor %vm627_vm1, %vm628_vm2 }
 0x1f3   :  { %1491 = vrcp.f32 %v2097_v60  ;;  %v604_v41 = vor.u32 1.1754944e-38, %v603_v38  ;;  %v615_v28 = vsel %vm2145_vm10, %v2081_v56, %v611_v42  ;;  %v670_v17 = vmul.f32 %v2102_v36, %v669_v43 }
 0x1f4   :  { %1493 = vpow2.f32 %v1390_v14  ;;  %v619_v14 = vor.u32 1.1754944e-38, %v618_v44  ;;  %vm617_vm12 = vcmp.eq.f32.partialorder %v616_v46, 8.507059e+37  ;;  %v600_v4 = vsel %vm2135_vm9, %v2079_v52, %v596_v21 }
 0x1f5   :  { %1495 = vrcp.f32 %v2141_v48  ;;  %v858_v21 = vadd.f32 %v813_v54, %v1906_v30  ;;  %v676_v43 = vand.u32 2147483647, %v2083_v20  ;;  %v678_v42 = vand.u32 2147483648, %v2083_v20 }
 0x1f6   :  { %v2172_v16 = vsel %vm617_vm12, %v619_v14, %v615_v28  ;;  %v671_v0 = vadd.f32 %v2102_v36, %v670_v17  ;;  %vm642_vm4 = vweird.f32 %v2094_v24  ;;  %vm643_vm5 = vweird.f32 %v2139_v3 }
 0x1f7   :  { %v743_v55 = vpop.permute.xlu1 %742  ;;  %v785_v44 = vmul.f32 %v747_v12, %v2172_v16  ;;  %1497 = vtanh.f32 %v858_v21  ;;  %vm2199_vm3 = vcmp.eq.f32.partialorder %v676_v43, 8.507059e+37  ;;  %v646_v21 = vand.u32 2147483647, %v2094_v24  ;;  %vm2236_vm9 = vmor %vm642_vm4, %vm643_vm5 }
 0x1f8   :  { %v1490_v57 = vpop.eup %1489  ;;  %v783_v62 = vmul.f32 %v743_v55, %v2151_v26  ;;  %v623_v55 = vmul.f32 %v2130_v27, %v2091_v6  ;;  %v751_v14 = vpop.permute.xlu2 %750 }
 0x1f9   :  { %v2154_v49 = vpop.eup %1491  ;;  %920 = vrot.lane.b32.xlu1 %v1490_v57, %s1587_s8  ;;  %v638_v57 = vmul.f32 %v2139_v3, %v2094_v24  ;;  %vm647_vm12 = vcmp.eq.f32.partialorder %v646_v21, 8.507059e+37 }
 0x1fa   :  { %822 = vrot.lane.b32.xlu0 %v783_v62, %s1586_s7  ;;  %v653_v56 = vmul.f32 %v2154_v49, %v2097_v60  ;;  %v1494_v15 = vpop.eup %1493  ;;  %v2174_v62 = vsel %vm602_vm11, %v604_v41, %v600_v4  ;;  %v624_v52 = vsub.f32 1.0, %v623_v55  ;;  %v679_v4 = vor.u32 1.1754944e-38, %v678_v42 }
 0x1fb   :  { %v639_v31 = vsub.f32 1.0, %v638_v57  ;;  %v2182_v46 = vadd.f32 1.0, %v1494_v15  ;;  %v2186_v54 = vpop.eup %1495  ;;  %v675_v55 = vsel %vm2191_vm15, %v2102_v36, %v671_v0  ;;  %v633_v15 = vand.u32 2147483648, %v2091_v6 }
 0x1fc   :  { %v654_v30 = vsub.f32 1.0, %v653_v56  ;;  %v625_v20 = vmul.f32 %v2130_v27, %v624_v52  ;;  %v698_v17 = vmul.f32 %v2186_v54, %v2141_v48  ;;  %v631_v56 = vand.u32 2147483647, %v2091_v6 }
 0x1fd   :  { %v640_v41 = vmul.f32 %v2139_v3, %v639_v31  ;;  %1499 = vrcp.f32 %v2182_v46  ;;  %v648_v52 = vand.u32 2147483648, %v2094_v24  ;;  %vm658_vm7 = vweird.f32 %v2154_v49 }
 0x1fe   :  { %v655_v57 = vmul.f32 %v2154_v49, %v654_v30  ;;  %v663_v42 = vand.u32 2147483648, %v2097_v60  ;;  %v661_v6 = vand.u32 2147483647, %v2097_v60  ;;  %v699_v28 = vsub.f32 1.0, %v698_v17  ;;  %vm2248_vm10 = vmor %vm657_vm6, %vm658_vm7 }
 0x1ff   :  { %v745_v38 = vpop.permute.xlu1 %744  ;;  %v641_v36 = vadd.f32 %v2139_v3, %v640_v41  ;;  %vm2255_vm11 = vcmp.eq.f32.partialorder %v631_v56, 8.507059e+37  ;;  %v634_v60 = vor.u32 1.1754944e-38, %v633_v15  ;;  %vm703_vm15 = vweird.f32 %v2186_v54 }
 0x200   :  { %v784_v53 = vmul.f32 %v745_v38, %v2174_v62  ;;  %v626_v38 = vadd.f32 %v2130_v27, %v625_v20  ;;  %v656_v41 = vadd.f32 %v2154_v49, %v655_v57  ;;  %v649_v20 = vor.u32 1.1754944e-38, %v648_v52  ;;  %v817_v17 = vpop.permute.xlu2 %816  ;;  %vm704_vm1 = vmor %vm702_vm14, %vm703_vm15 }
 0x201   :  { %826 = vrot.lane.b32.xlu1 %v785_v44, %s1586_s7  ;;  %v2222_v44 = vsel %vm2199_vm3, %v679_v4, %v675_v55  ;;  %v645_v57 = vsel %vm2236_vm9, %v2139_v3, %v641_v36  ;;  %vm662_vm13 = vcmp.eq.f32.partialorder %v661_v6, 8.507059e+37  ;;  %v700_v56 = vmul.f32 %v2186_v54, %v699_v28 }
 0x202   :  { %824 = vrot.lane.b32.xlu0 %v784_v53, %s1586_s7  ;;  %v1498_v53 = vpop.eup %1497  ;;  %v660_v52 = vsel %vm2248_vm10, %v2154_v49, %v656_v41  ;;  %v2271_v0 = vsel %vm647_vm12, %v649_v20, %v645_v57  ;;  %v860_v3 = vadd.f32 %v817_v17, %v1916_v35  ;;  %v708_v36 = vand.u32 2147483648, %v2141_v48 }
 0x203   :  { %v2252_v4 = vpop.eup %1499  ;;  %v706_v41 = vand.u32 2147483647, %v2141_v48  ;;  %vm687_vm3 = vweird.f32 %v2182_v46 }
 0x204   :  { %1501 = vtanh.f32 %v860_v3  ;;  %vm688_vm4 = vweird.f32 %v2252_v4 }
 0x205   :  { %vm707_vm2 = vcmp.eq.f32.partialorder %v706_v41, 8.507059e+37  ;;  %vm689_vm5 = vmor %vm687_vm3, %vm688_vm4  ;;  %v984_v41 = vmul.f32 %v1958_v47, %v1793_v2 }
 0x207   :  { %v755_v31 = vpop.permute.xlu1 %754  ;;  %v815_v12 = vpop.permute.xlu0 %814 }
 0x208   :  { %v789_v30 = vmul.f32 %v755_v31, %v2222_v44  ;;  %v664_v31 = vor.u32 1.1754944e-38, %v663_v42  ;;  %v701_v42 = vadd.f32 %v2186_v54, %v700_v56  ;;  %v821_v28 = vpop.permute.xlu2 %820 }
 0x209   :  { %924 = vrot.lane.b32.xlu1 %v1498_v53, %s1587_s8  ;;  %v630_v53 = vsel %vm2229_vm8, %v2130_v27, %v626_v38  ;;  %v787_v27 = vmul.f32 %v751_v14, %v2271_v0  ;;  %v859_v38 = vadd.f32 %v815_v12, %v1911_v32  ;;  %v709_v32 = vor.u32 1.1754944e-38, %v708_v36 }
 0x20a   :  { %834 = vrot.lane.b32.xlu0 %v789_v30, %s1586_s7  ;;  %v683_v30 = vmul.f32 %v2252_v4, %v2182_v46  ;;  %v2279_v15 = vsel %vm2255_vm11, %v634_v60, %v630_v53  ;;  %v2281_v21 = vsel %vm662_vm13, %v664_v31, %v660_v52  ;;  %v705_v12 = vsel %vm704_vm1, %v2186_v54, %v701_v42  ;;  %v1502_v57 = vpop.eup %1501 }
 0x20b   :  { %1503 = vtanh.f32 %v859_v38  ;;  %v862_v48 = vadd.f32 %v821_v28, %v1926_v40  ;;  %v2295_v55 = vsel %vm707_vm2, %v709_v32, %v705_v12  ;;  %v693_v31 = vand.u32 2147483648, %v2182_v46 }
 0x20c   :  { %v684_v6 = vsub.f32 1.0, %v683_v30  ;;  %v691_v53 = vand.u32 2147483647, %v2182_v46  ;;  %v985_v42 = vmul.f32 %v1940_v11, %v1801_v9 }
 0x20d   :  { %1505 = vtanh.f32 %v862_v48  ;;  %v694_v52 = vor.u32 1.1754944e-38, %v693_v31 }
 0x20e   :  { %v685_v24 = vmul.f32 %v2252_v4, %v684_v6  ;;  %vm692_vm6 = vcmp.eq.f32.partialorder %v691_v53, 8.507059e+37  ;;  %v987_v53 = vmul.f32 %v2005_v58, %v1813_v19 }
 0x20f   :  { %v749_v49 = vpop.permute.xlu1 %748  ;;  %v753_v35 = vpop.permute.xlu0 %752 }
 0x210   :  { %v786_v43 = vmul.f32 %v749_v49, %v2279_v15  ;;  %v788_v14 = vmul.f32 %v753_v35, %v2281_v21  ;;  %v686_v54 = vadd.f32 %v2252_v4, %v685_v24  ;;  %v888_v35 = vsub.f32 1.0, %v1958_v47 }
 0x211   :  { %830 = vrot.lane.b32.xlu1 %v787_v27, %s1586_s7  ;;  %v1504_v40 = vpop.eup %1503 }
 0x212   :  { %828 = vrot.lane.b32.xlu0 %v786_v43, %s1586_s7  ;;  %832 = vrot.lane.b32.xlu2 %v788_v14, %s1586_s7  ;;  %v690_v56 = vsel %vm689_vm5, %v2252_v4, %v686_v54  ;;  %v889_v4 = vsub.f32 1.0, %v1940_v11 }
 0x213   :  { %v1506_v30 = vpop.eup %1505  ;;  %v2308_v27 = vsel %vm692_vm6, %v694_v52, %v690_v56 }
 0x217   :  { %v759_v20 = vpop.permute.xlu1 %758  ;;  %v819_v60 = vpop.permute.xlu0 %818 }
 0x218   :  { %v791_v17 = vmul.f32 %v759_v20, %v2295_v55  ;;  %v861_v3 = vadd.f32 %v819_v60, %v1921_v37  ;;  %v890_v60 = vsub.f32 1.0, %v1985_v18 }
 0x219   :  { %928 = vrot.lane.b32.xlu1 %v1502_v57, %s1587_s8 }
 0x21a   :  { %838 = vrot.lane.b32.xlu0 %v791_v17, %s1586_s7  ;;  %926 = vrot.lane.b32.xlu2 %v1504_v40, %s1587_s8  ;;  %1507 = vtanh.f32 %v861_v3 }
 0x21f   :  { %v757_v49 = vpop.permute.xlu0 %756 }
 0x220   :  { %v790_v36 = vmul.f32 %v757_v49, %v2308_v27  ;;  %v1508_v46 = vpop.eup %1507 }
 0x221   :  { %932 = vrot.lane.b32.xlu1 %v1506_v30, %s1587_s8 }
 0x222   :  { %836 = vrot.lane.b32.xlu2 %v790_v36, %s1586_s7 }
 0x22a   :  { %930 = vrot.lane.b32.xlu2 %v1508_v46, %s1587_s8 }
 0x22b   :  { %v923_v38 = vpop.permute.xlu2 %922 }
 0x22c   :  { %v969_v43 = vmul.f32 %v923_v38, %v889_v4 }
 0x22e   :  { %v2321_v12 = vadd.f32 %v985_v42, %v969_v43 }
 0x26b   :  { %v921_v37 = vpop.permute.xlu1 %920 }
 0x26c   :  { %v968_v14 = vmul.f32 %v921_v37, %v888_v35  ;;  %v823_v6 = vpop.permute.xlu0 %822  ;;  %v833_v28 = vpop.permute.xlu2 %832  ;;  %v892_v35 = vsub.f32 1.0, %v2023_v25 }
 0x26d   :  { %v863_v32 = vadd.f32 %v823_v6, %v1972_v63  ;;  %v891_v63 = vsub.f32 1.0, %v2005_v58  ;;  %v868_v36 = vadd.f32 %v833_v28, %v2032_v5  ;;  %v893_v5 = vsub.f32 1.0, %v2041_v61 }
 0x26e   :  { %v2323_v24 = vadd.f32 %v984_v41, %v968_v14  ;;  %v988_v41 = vmul.f32 %v2023_v25, %v1818_v23  ;;  %v1410_v25 = vld [vmem:[%s2578_s4 + $0x8] sm:$0xff] }
 0x26f   :  { %1509 = vtanh.f32 %v863_v32  ;;  %1095 = vmatpush.bf16.msra.mxu2 %v1410_v25  ;;  %1420 = vmatpush.bf16.msra.mxu3 %v1410_v25 }
 0x270   :  { %v1016_v48 = vpack.c.bf16 %v2321_v12, %v2323_v24 }
 0x272   :  { %1037 = vrot.lane.b32.xlu0 %v1016_v48, %s1587_s8 }
 0x273   :  { %v827_v20 = vpop.permute.xlu1 %826 }
 0x274   :  { %v865_v9 = vadd.f32 %v827_v20, %v1949_v22  ;;  %v825_v11 = vpop.permute.xlu0 %824  ;;  %v927_v47 = vpop.permute.xlu2 %926  ;;  %v986_v22 = vmul.f32 %v1985_v18, %v1806_v13 }
 0x275   :  { %v1510_v2 = vpop.eup %1509  ;;  %v864_v57 = vadd.f32 %v825_v11, %v1989_v8  ;;  %v971_v17 = vmul.f32 %v927_v47, %v891_v63  ;;  %v991_v63 = vmul.f32 %v2151_v26, %v1837_v39  ;;  %v993_v39 = vmul.f32 %v2172_v16, %v1853_v51  ;;  %v2613_v51 = vld [vmem:[#allocation7_spill] sm:$0xff] }
 0x276   :  { %1511 = vtanh.f32 %v865_v9  ;;  %934 = vrot.lane.b32.xlu2 %v1510_v2, %s1587_s8  ;;  %v895_v2 = vsub.f32 1.0, %v2151_v26  ;;  %v992_v26 = vmul.f32 %v2174_v62, %v1845_v45  ;;  %v2614_v45 = vld [vmem:[#allocation6_spill] sm:$0xff] }
 0x277   :  { %1513 = vtanh.f32 %v864_v57  ;;  %v2338_v3 = vadd.f32 %v987_v53, %v971_v17  ;;  %v990_v57 = vmul.f32 %v2052_v1, %v1831_v34  ;;  %v896_v34 = vsub.f32 1.0, %v2174_v62 }
 0x278   :  { %v996_v62 = vmul.f32 %v2281_v21, %v2614_v45 }
 0x27b   :  { %v925_v31 = vpop.permute.xlu1 %924 }
 0x27c   :  { %v1512_v54 = vpop.eup %1511  ;;  %v970_v40 = vmul.f32 %v925_v31, %v890_v60  ;;  %v835_v52 = vpop.permute.xlu0 %834 }
 0x27d   :  { %v1514_v8 = vpop.eup %1513  ;;  %v837_v56 = vpop.permute.xlu2 %836  ;;  %v869_v30 = vadd.f32 %v835_v52, %v2008_v59 }
 0x27e   :  { %v2340_v49 = vadd.f32 %v986_v22, %v970_v40  ;;  %938 = vrot.lane.b32.xlu2 %v1512_v54, %s1587_s8  ;;  %936 = vrot.lane.b32.xlu1 %v1514_v8, %s1587_s8  ;;  %v897_v40 = vsub.f32 1.0, %v2172_v16  ;;  %v997_v16 = vmul.f32 %v2222_v44, %v2613_v51 }
 0x27f   :  { %1515 = vtanh.f32 %v869_v30 }
 0x280   :  { %v1017_v13 = vpack.c.bf16 %v2338_v3, %v2340_v49  ;;  %1517 = vtanh.f32 %v868_v36 }
 0x282   :  { %1039 = vrot.lane.b32.xlu0 %v1017_v13, %s1587_s8 }
 0x283   :  { %v831_v19 = vpop.permute.xlu1 %830 }
 0x284   :  { %v867_v18 = vadd.f32 %v831_v19, %v2013_v7  ;;  %v829_v58 = vpop.permute.xlu0 %828  ;;  %v989_v7 = vmul.f32 %v2041_v61, %v1825_v29  ;;  %v1409_v61 = vld [vmem:[%s2578_s4] sm:$0xff] }
 0x285   :  { %v1516_v59 = vpop.eup %1515  ;;  %v931_v46 = vpop.permute.xlu2 %930  ;;  %v866_v38 = vadd.f32 %v829_v58, %v2028_v33  ;;  %v870_v33 = vadd.f32 %v837_v56, %v2055_v10  ;;  %1096 = vmatpush.bf16.msra.mxu2 %v1409_v61  ;;  %1421 = vmatpush.bf16.msra.mxu3 %v1409_v61  ;;  %v894_v10 = vsub.f32 1.0, %v2052_v1 }
 0x286   :  { %1519 = vtanh.f32 %v867_v18  ;;  %946 = vrot.lane.b32.xlu1 %v1516_v59, %s1587_s8  ;;  %v1518_v4 = vpop.eup %1517  ;;  %v973_v43 = vmul.f32 %v931_v46, %v893_v5  ;;  %v901_v18 = vsub.f32 1.0, %v2222_v44  ;;  %v900_v59 = vsub.f32 1.0, %v2281_v21 }
 0x287   :  { %1521 = vtanh.f32 %v866_v38 }
 0x288   :  { %v2359_v28 = vadd.f32 %v989_v7, %v973_v43  ;;  %1523 = vtanh.f32 %v870_v33  ;;  %v2616_v33 = vld [vmem:[#allocation9_spill] sm:$0xff] }
 0x289   :  { %v994_v21 = vmul.f32 %v2279_v15, %v2616_v33 }
 0x28a   :  { %944 = vrot.lane.b32.xlu0 %v1518_v4, %s1587_s8 }
 0x28b   :  { %v929_v37 = vpop.permute.xlu1 %928 }
 0x28c   :  { %v1520_v42 = vpop.eup %1519  ;;  %v972_v14 = vmul.f32 %v929_v37, %v892_v35  ;;  %v839_v6 = vpop.permute.xlu0 %838  ;;  %v899_v37 = vsub.f32 1.0, %v2271_v0 }
 0x28d   :  { %v871_v48 = vadd.f32 %v839_v6, %v2045_v50  ;;  %v1522_v9 = vpop.eup %1521  ;;  %v2615_v6 = vld [vmem:[#allocation10_spill] sm:$0xff] }
 0x28e   :  { %v2361_v32 = vadd.f32 %v988_v41, %v972_v14  ;;  %942 = vrot.lane.b32.xlu1 %v1520_v42, %s1587_s8  ;;  %v1524_v23 = vpop.eup %1523  ;;  %v898_v41 = vsub.f32 1.0, %v2279_v15  ;;  %v995_v44 = vmul.f32 %v2271_v0, %v2615_v6  ;;  %v903_v0 = vsub.f32 1.0, %v2295_v55 }
 0x28f   :  { %1525 = vtanh.f32 %v871_v48 }
 0x290   :  { %v1018_v20 = vpack.c.bf16 %v2359_v28, %v2361_v32 }
 0x292   :  { %1041 = vrot.lane.b32.xlu2 %v1018_v20, %s1587_s8  ;;  %940 = vrot.lane.b32.xlu0 %v1522_v9, %s1587_s8 }
 0x293   :  { %v933_v50 = vpop.permute.xlu1 %932 }
 0x294   :  { %v974_v11 = vmul.f32 %v933_v50, %v894_v10  ;;  %v2617_v10 = vld [vmem:[#allocation8_spill] sm:$0xff] }
 0x295   :  { %v1526_v29 = vpop.eup %1525  ;;  %v998_v15 = vmul.f32 %v2308_v27, %v2617_v10 }
 0x296   :  { %v1006_v60 = vadd.f32 %v990_v57, %v974_v11  ;;  %v2618_v11 = vld [vmem:[#allocation11_spill] sm:$0xff] }
 0x29a   :  { %948 = vrot.lane.b32.xlu2 %v1524_v23, %s1587_s8  ;;  %950 = vrot.lane.b32.xlu0 %v1526_v29, %s1587_s8  ;;  %v902_v29 = vsub.f32 1.0, %v2308_v27 }
 0x2d0   :  { %v935_v47 = vpop.permute.xlu2 %934 }
 0x2d1   :  { %v975_v17 = vmul.f32 %v935_v47, %v895_v2  ;;  %v999_v2 = vmul.f32 %v2295_v55, %v2618_v11 }
 0x2d3   :  { %v2383_v31 = vadd.f32 %v991_v63, %v975_v17 }
 0x2d5   :  { %v1019_v54 = vpack.c.bf16 %v2383_v31, %v1006_v60 }
 0x2d7   :  { %1043 = vrot.lane.b32.xlu1 %v1019_v54, %s1587_s8 }
 0x2d8   :  { %v939_v22 = vpop.permute.xlu2 %938 }
 0x2d9   :  { %v977_v52 = vmul.f32 %v939_v22, %v897_v40 }
 0x2db   :  { %v1009_v56 = vadd.f32 %v993_v39, %v977_v52 }
 0x2e4   :  { %v1038_v53 = vpop.permute.xlu0 %1037 }
 0x2e5   :  { %1400 = vmatmul.msk.bf16.vlgmr.msra.gmra.mxu2 %vm45_vm0, %v1038_v53 }
 0x2ec   :  { %v1042_v5 = vpop.permute.xlu2 %1041 }
 0x2f0   :  { %v937_v1 = vpop.permute.xlu1 %936 }
 0x2f1   :  { %v976_v8 = vmul.f32 %v937_v1, %v896_v34 }
 0x2f3   :  { %v1008_v30 = vadd.f32 %v992_v26, %v976_v8 }
 0x2f4   :  { %v1040_v36 = vpop.permute.xlu0 %1039  ;;  %v949_v23 = vpop.permute.xlu2 %948 }
 0x2f5   :  { %1401 = vmatmul.msk.bf16.gmra.mxu2 %vm45_vm0, %v1040_v36  ;;  %v1020_v13 = vpack.c.bf16 %v1009_v56, %v1008_v30  ;;  %v982_v61 = vmul.f32 %v949_v23, %v902_v29 }
 0x2f7   :  { %1045 = vrot.lane.b32.xlu2 %v1020_v13, %s1587_s8  ;;  %v1014_v57 = vadd.f32 %v998_v15, %v982_v61 }
 0x2f8   :  { %v947_v19 = vpop.permute.xlu1 %946 }
 0x2f9   :  { %v981_v58 = vmul.f32 %v947_v19, %v901_v18 }
 0x2fb   :  { %v1013_v4 = vadd.f32 %v997_v16, %v981_v58 }
 0x2fc   :  { %v945_v46 = vpop.permute.xlu0 %944 }
 0x2fd   :  { %v980_v38 = vmul.f32 %v945_v46, %v900_v59 }
 0x2ff   :  { %v1012_v43 = vadd.f32 %v996_v62, %v980_v38 }
 0x300   :  { %v943_v35 = vpop.permute.xlu1 %942 }
 0x301   :  { %v1022_v42 = vpack.c.bf16 %v1013_v4, %v1012_v43  ;;  %v979_v7 = vmul.f32 %v943_v35, %v899_v37 }
 0x303   :  { %1049 = vrot.lane.b32.xlu0 %v1022_v42, %s1587_s8  ;;  %v1011_v20 = vadd.f32 %v995_v44, %v979_v7 }
 0x304   :  { %v941_v14 = vpop.permute.xlu0 %940 }
 0x305   :  { %v978_v48 = vmul.f32 %v941_v14, %v898_v41  ;;  %1402 = vmatmul.msk.bf16.gmra.mxu2 %vm45_vm0, %v1042_v5 }
 0x307   :  { %v1010_v9 = vadd.f32 %v994_v21, %v978_v48 }
 0x309   :  { %v1021_v25 = vpack.c.bf16 %v1011_v20, %v1010_v9 }
 0x30b   :  { %1170 = vrot.lane.b32.xlu0 %v2323_v24, %s1587_s8  ;;  %1047 = vrot.lane.b32.xlu1 %v1021_v25, %s1587_s8 }
 0x30c   :  { %v951_v50 = vpop.permute.xlu0 %950 }
 0x30d   :  { %v983_v47 = vmul.f32 %v951_v50, %v903_v0 }
 0x30f   :  { %v1015_v63 = vadd.f32 %v999_v2, %v983_v47 }
 0x311   :  { %v1023_v17 = vpack.c.bf16 %v1015_v63, %v1014_v57 }
 0x313   :  { %1176 = vrot.lane.b32.xlu0 %v2338_v3, %s1587_s8  ;;  %1172 = vrot.lane.b32.xlu1 %v2321_v12, %s1587_s8  ;;  %v2446_v12 = vld [vmem:[%s2579_s5 + $0x2] ss:$0 sm:$0xff]  ;;  %s1588_s5 = smov [#allocation3]  }
 0x314   :  { %1051 = vrot.lane.b32.xlu2 %v1023_v17, %s1587_s8 }
 0x31b   :  { %1182 = vrot.lane.b32.xlu0 %v1006_v60, %s1587_s8  ;;  %1178 = vrot.lane.b32.xlu1 %v2361_v32, %s1587_s8 }
 0x31c   :  { %1174 = vrot.lane.b32.xlu2 %v2340_v49, %s1587_s8 }
 0x323   :  { %1188 = vrot.lane.b32.xlu0 %v1009_v56, %s1587_s8  ;;  %1184 = vrot.lane.b32.xlu1 %v2383_v31, %s1587_s8 }
 0x324   :  { %1180 = vrot.lane.b32.xlu2 %v2359_v28, %s1587_s8 }
 0x32b   :  { %1194 = vrot.lane.b32.xlu0 %v1012_v43, %s1587_s8  ;;  %1190 = vrot.lane.b32.xlu1 %v1010_v9, %s1587_s8 }
 0x32c   :  { %1186 = vrot.lane.b32.xlu2 %v1008_v30, %s1587_s8 }
 0x333   :  { %1196 = vrot.lane.b32.xlu1 %v1013_v4, %s1587_s8  ;;  %1200 = vrot.lane.b32.xlu0 %v1015_v63, %s1587_s8 }
 0x334   :  { %1192 = vrot.lane.b32.xlu2 %v1011_v20, %s1587_s8 }
 0x33c   :  { %1198 = vrot.lane.b32.xlu2 %v1014_v57, %s1587_s8 }
 0x349   :  { %v1044_v55 = vpop.permute.xlu1 %1043 }
 0x34a   :  { %1403 = vmatmul.msk.bf16.gmra.mxu2 %vm45_vm0, %v1044_v55 }
 0x351   :  { %v1046_v27 = vpop.permute.xlu2 %1045 }
 0x35a   :  { %1404 = vmatmul.msk.bf16.gmra.mxu2 %vm45_vm0, %v1046_v27 }
 0x368   :  { %v1098_v24 = vpop.f32.mrf.mxu2 }
 0x369   :  { %v1099_v3 = vadd.f32 %v2446_v12, %v1098_v24 }
 0x36b   :  { %1527 = vtanh.f32 %v1099_v3 }
 0x36e   :  { %v1052_v49 = vpop.permute.xlu2 %1051 }
 0x370   :  { %v1100_v28 = vpop.f32.mrf.mxu2 }
 0x371   :  { %v1528_v32 = vpop.eup %1527  ;;  %v1101_v60 = vadd.f32 %v2446_v12, %v1100_v28 }
 0x372   :  { %1234 = vrot.lane.b32.xlu1 %v1528_v32, %s1585_s10 }
 0x373   :  { %1529 = vtanh.f32 %v1101_v60 }
 0x375   :  { %v1050_v31 = vpop.permute.xlu0 %1049 }
 0x376   :  { %v2451_v54 = vpop.permute.xlu2 %1174  ;;  %1406 = vmatmul.msk.bf16.vlgmr.msra.gmra.mxu3 %vm45_vm0, %v1050_v31 }
 0x377   :  { %1316 = vst.msk [vmem:[#allocation2 + $0x10] sm:$0xff] %vm45_vm0, %v2451_v54 }
 0x378   :  { %v1103_v53 = vpop.f32.mrf.mxu2 }
 0x379   :  { %v1530_v22 = vpop.eup %1529  ;;  %v1104_v40 = vadd.f32 %v2446_v12, %v1103_v53 }
 0x37a   :  { %1236 = vrot.lane.b32.xlu2 %v1530_v22, %s1585_s10 }
 0x37b   :  { %1531 = vtanh.f32 %v1104_v40 }
 0x37d   :  { %v1048_v52 = vpop.permute.xlu1 %1047  ;;  %v2458_v34 = vpop.permute.xlu0 %1170 }
 0x37e   :  { %v2460_v1 = vpop.permute.xlu2 %1180  ;;  %1314 = vst.msk [vmem:[#allocation2] sm:$0xff] %vm45_vm0, %v2458_v34  ;;  %1405 = vmatmul.msk.bf16.gmra.mxu2 %vm45_vm0, %v1048_v52 }
 0x37f   :  { %1319 = vst.msk [vmem:[#allocation2 + $0x28] sm:$0xff] %vm45_vm0, %v2460_v1 }
 0x380   :  { %v1105_v39 = vpop.f32.mrf.mxu2 }
 0x381   :  { %v1532_v26 = vpop.eup %1531  ;;  %v1106_v8 = vadd.f32 %v2446_v12, %v1105_v39 }
 0x382   :  { %1238 = vrot.lane.b32.xlu0 %v1532_v26, %s1585_s10 }
 0x383   :  { %1533 = vtanh.f32 %v1106_v8 }
 0x385   :  { %v1173_v56 = vpop.permute.xlu1 %1172  ;;  %v2469_v30 = vpop.permute.xlu0 %1176 }
 0x386   :  { %1315 = vst.msk [vmem:[#allocation2 + $0x8] sm:$0xff] %vm45_vm0, %v1173_v56  ;;  %v2472_v36 = vpop.permute.xlu2 %1186  ;;  %1407 = vmatmul.msk.bf16.gmra.mxu3 %vm45_vm0, %v1052_v49 }
 0x387   :  { %1322 = vst.msk [vmem:[#allocation2 + $0x40] sm:$0xff] %vm45_vm0, %v2472_v36 }
 0x388   :  { %1317 = vst.msk [vmem:[#allocation2 + $0x18] sm:$0xff] %vm45_vm0, %v2469_v30  ;;  %v1108_v13 = vpop.f32.mrf.mxu2 }
 0x389   :  { %v1534_v19 = vpop.eup %1533  ;;  %v1109_v18 = vadd.f32 %v2446_v12, %v1108_v13 }
 0x38a   :  { %1240 = vrot.lane.b32.xlu1 %v1534_v19, %s1585_s10 }
 0x38b   :  { %1535 = vtanh.f32 %v1109_v18 }
 0x38d   :  { %v1179_v58 = vpop.permute.xlu1 %1178  ;;  %v2481_v59 = vpop.permute.xlu0 %1182 }
 0x38e   :  { %1318 = vst.msk [vmem:[#allocation2 + $0x20] sm:$0xff] %vm45_vm0, %v1179_v58  ;;  %v2484_v46 = vpop.permute.xlu2 %1192 }
 0x38f   :  { %1325 = vst.msk [vmem:[#allocation2 + $0x58] sm:$0xff] %vm45_vm0, %v2484_v46 }
 0x390   :  { %1320 = vst.msk [vmem:[#allocation2 + $0x30] sm:$0xff] %vm45_vm0, %v2481_v59  ;;  %v1110_v51 = vpop.f32.mrf.mxu2 }
 0x391   :  { %v1536_v16 = vpop.eup %1535  ;;  %v1111_v45 = vadd.f32 %v2446_v12, %v1110_v51 }
 0x392   :  { %1242 = vrot.lane.b32.xlu2 %v1536_v16, %s1585_s10 }
 0x393   :  { %1537 = vtanh.f32 %v1111_v45 }
 0x395   :  { %v2492_v62 = vpop.permute.xlu1 %1184  ;;  %v2494_v38 = vpop.permute.xlu0 %1188 }
 0x396   :  { %1321 = vst.msk [vmem:[#allocation2 + $0x38] sm:$0xff] %vm45_vm0, %v2492_v62  ;;  %v2498_v5 = vpop.permute.xlu2 %1198 }
 0x397   :  { %1328 = vst.msk [vmem:[#allocation2 + $0x70] sm:$0xff] %vm45_vm0, %v2498_v5 }
 0x398   :  { %1323 = vst.msk [vmem:[#allocation2 + $0x48] sm:$0xff] %vm45_vm0, %v2494_v38 }
 0x399   :  { %v1538_v4 = vpop.eup %1537 }
 0x39a   :  { %1244 = vrot.lane.b32.xlu0 %v1538_v4, %s1585_s10 }
 0x39d   :  { %v2505_v43 = vpop.permute.xlu1 %1190  ;;  %v2507_v35 = vpop.permute.xlu0 %1194 }
 0x39e   :  { %1324 = vst.msk [vmem:[#allocation2 + $0x50] sm:$0xff] %vm45_vm0, %v2505_v43 }
 0x39f   :  { %1326 = vst.msk [vmem:[#allocation2 + $0x60] sm:$0xff] %vm45_vm0, %v2507_v35 }
 0x3a5   :  { %v2513_v37 = vpop.permute.xlu1 %1196  ;;  %v2515_v42 = vpop.permute.xlu0 %1200 }
 0x3a6   :  { %1327 = vst.msk [vmem:[#allocation2 + $0x68] sm:$0xff] %vm45_vm0, %v2513_v37 }
 0x3a7   :  { %1329 = vst.msk [vmem:[#allocation2 + $0x78] sm:$0xff] %vm45_vm0, %v2515_v42 }
 0x3cd   :  { %v1113_v7 = vpop.f32.mrf.mxu2 }
 0x3ce   :  { %v1114_v41 = vadd.f32 %v2446_v12, %v1113_v7 }
 0x3d0   :  { %1539 = vtanh.f32 %v1114_v41 }
 0x3d4   :  { %v1237_v14 = vpop.permute.xlu2 %1236 }
 0x3d5   :  { %v1283_v6 = vsel %vm45_vm0, %v1173_v56, %v1237_v14  ;;  %v1115_v44 = vpop.f32.mrf.mxu2 }
 0x3d6   :  { %v1540_v33 = vpop.eup %1539  ;;  %1299 = vst [vmem:[#allocation3 + $0x8] sm:$0xff] %v1283_v6  ;;  %v1116_v21 = vadd.f32 %v2446_v12, %v1115_v44 }
 0x3d7   :  { %1246 = vrot.lane.b32.xlu1 %v1540_v33, %s1585_s10 }
 0x3d8   :  { %1541 = vtanh.f32 %v1116_v21 }
 0x3dd   :  { %v1118_v48 = vpop.f32.mrf.mxu2 }
 0x3de   :  { %v1542_v20 = vpop.eup %1541  ;;  %v1119_v9 = vadd.f32 %v2446_v12, %v1118_v48 }
 0x3df   :  { %1248 = vrot.lane.b32.xlu2 %v1542_v20, %s1585_s10 }
 0x3e0   :  { %1543 = vtanh.f32 %v1119_v9 }
 0x3e4   :  { %v1235_v23 = vpop.permute.xlu1 %1234 }
 0x3e5   :  { %v1282_v29 = vsel %vm45_vm0, %v2458_v34, %v1235_v23  ;;  %v1120_v25 = vpop.f32.mrf.mxu2 }
 0x3e6   :  { %v1544_v61 = vpop.eup %1543  ;;  %1298 = vst [vmem:[#allocation3] sm:$0xff] %v1282_v29  ;;  %v1121_v0 = vadd.f32 %v2446_v12, %v1120_v25 }
 0x3e7   :  { %1250 = vrot.lane.b32.xlu0 %v1544_v61, %s1585_s10 }
 0x3e8   :  { %1545 = vtanh.f32 %v1121_v0 }
 0x3ec   :  { %v1243_v50 = vpop.permute.xlu2 %1242 }
 0x3ed   :  { %v1286_v10 = vsel %vm45_vm0, %v1179_v58, %v1243_v50 }
 0x3ee   :  { %v1546_v15 = vpop.eup %1545  ;;  %1302 = vst [vmem:[#allocation3 + $0x20] sm:$0xff] %v1286_v10 }
 0x3ef   :  { %1252 = vrot.lane.b32.xlu1 %v1546_v15, %s1585_s10 }
 0x3f4   :  { %v1239_v11 = vpop.permute.xlu0 %1238 }
 0x3f5   :  { %v1284_v2 = vsel %vm45_vm0, %v2451_v54, %v1239_v11 }
 0x3f6   :  { %1300 = vst [vmem:[#allocation3 + $0x10] sm:$0xff] %v1284_v2 }
 0x3f9   :  { %v1128_v47 = vpop.f32.mrf.mxu3 }
 0x3fa   :  { %v1129_v57 = vadd.f32 %v2446_v12, %v1128_v47 }
 0x3fc   :  { %1547 = vtanh.f32 %v1129_v57  ;;  %v1241_v63 = vpop.permute.xlu1 %1240 }
 0x3fd   :  { %v1285_v17 = vsel %vm45_vm0, %v2469_v30, %v1241_v63 }
 0x3fe   :  { %1301 = vst [vmem:[#allocation3 + $0x18] sm:$0xff] %v1285_v17 }
 0x401   :  { %v1123_v55 = vpop.f32.mrf.mxu2  ;;  %v1130_v27 = vpop.f32.mrf.mxu3 }
 0x402   :  { %v1548_v24 = vpop.eup %1547  ;;  %v1124_v3 = vadd.f32 %v2446_v12, %v1123_v55  ;;  %v1131_v49 = vadd.f32 %v2446_v12, %v1130_v27 }
 0x403   :  { %1258 = vrot.lane.b32.xlu1 %v1548_v24, %s1585_s10 }
 0x404   :  { %1549 = vtanh.f32 %v1124_v3 }
 0x405   :  { %1551 = vtanh.f32 %v1131_v49 }
 0x409   :  { %v1125_v28 = vpop.f32.mrf.mxu2  ;;  %v1133_v32 = vpop.f32.mrf.mxu3 }
 0x40a   :  { %v1550_v60 = vpop.eup %1549  ;;  %v1126_v31 = vadd.f32 %v2446_v12, %v1125_v28  ;;  %v1134_v22 = vadd.f32 %v2446_v12, %v1133_v32 }
 0x40b   :  { %1254 = vrot.lane.b32.xlu2 %v1550_v60, %s1585_s10  ;;  %v1552_v40 = vpop.eup %1551 }
 0x40c   :  { %1553 = vtanh.f32 %v1126_v31  ;;  %v1245_v54 = vpop.permute.xlu0 %1244 }
 0x40d   :  { %v1287_v53 = vsel %vm45_vm0, %v2460_v1, %v1245_v54  ;;  %1555 = vtanh.f32 %v1134_v22 }
 0x40e   :  { %1303 = vst [vmem:[#allocation3 + $0x28] sm:$0xff] %v1287_v53 }
 0x411   :  { %v1135_v52 = vpop.f32.mrf.mxu3 }
 0x412   :  { %v1554_v34 = vpop.eup %1553  ;;  %v1136_v39 = vadd.f32 %v2446_v12, %v1135_v52 }
 0x413   :  { %1256 = vrot.lane.b32.xlu0 %v1554_v34, %s1585_s10  ;;  %1260 = vrot.lane.b32.xlu2 %v1552_v40, %s1585_s10  ;;  %v1556_v26 = vpop.eup %1555 }
 0x414   :  { %1557 = vtanh.f32 %v1136_v39 }
 0x41a   :  { %v1558_v8 = vpop.eup %1557 }
 0x41b   :  { %1262 = vrot.lane.b32.xlu0 %v1556_v26, %s1585_s10  ;;  %1264 = vrot.lane.b32.xlu1 %v1558_v8, %s1585_s10  ;;  %s1334_s10 = sshll.u32 %s1588_s5, 4  ;;  %s1335_s10 = int_to_ptr.vmem [resolvable:$true] %s1334_s10 }
 0x439   :  { %v1249_v1 = vpop.permute.xlu2 %1248 }
 0x43a   :  { %v1289_v56 = vsel %vm45_vm0, %v2492_v62, %v1249_v1 }
 0x43b   :  { %1305 = vst [vmem:[#allocation3 + $0x38] sm:$0xff] %v1289_v56 }
 0x449   :  { %v1247_v30 = vpop.permute.xlu1 %1246 }
 0x44a   :  { %v1288_v12 = vsel %vm45_vm0, %v2481_v59, %v1247_v30 }
 0x44b   :  { %1304 = vst [vmem:[#allocation3 + $0x30] sm:$0xff] %v1288_v12 }
 0x459   :  { %v1251_v13 = vpop.permute.xlu0 %1250 }
 0x45a   :  { %v1290_v19 = vsel %vm45_vm0, %v2472_v36, %v1251_v13 }
 0x45b   :  { %1306 = vst [vmem:[#allocation3 + $0x40] sm:$0xff] %v1290_v19 }
 0x461   :  { %v1253_v18 = vpop.permute.xlu1 %1252 }
 0x462   :  { %v1291_v58 = vsel %vm45_vm0, %v2494_v38, %v1253_v18 }
 0x463   :  { %1307 = vst [vmem:[#allocation3 + $0x48] sm:$0xff] %v1291_v58 }
 0x465   :  { %v1255_v51 = vpop.permute.xlu2 %1254 }
 0x466   :  { %v1292_v16 = vsel %vm45_vm0, %v2505_v43, %v1255_v51 }
 0x467   :  { %1308 = vst [vmem:[#allocation3 + $0x50] sm:$0xff] %v1292_v16 }
 0x46d   :  { %v1261_v45 = vpop.permute.xlu2 %1260 }
 0x46e   :  { %v1295_v59 = vsel %vm45_vm0, %v2513_v37, %v1261_v45 }
 0x46f   :  { %1311 = vst [vmem:[#allocation3 + $0x68] sm:$0xff] %v1295_v59 }
 0x475   :  { %v1259_v62 = vpop.permute.xlu1 %1258 }
 0x476   :  { %v1294_v36 = vsel %vm45_vm0, %v2507_v35, %v1259_v62 }
 0x477   :  { %1310 = vst [vmem:[#allocation3 + $0x60] sm:$0xff] %v1294_v36 }
 0x485   :  { %v1257_v4 = vpop.permute.xlu0 %1256 }
 0x486   :  { %v1293_v38 = vsel %vm45_vm0, %v2484_v46, %v1257_v4 }
 0x487   :  { %1309 = vst [vmem:[#allocation3 + $0x58] sm:$0xff] %v1293_v38 }
 0x48d   :  { %v1265_v43 = vpop.permute.xlu1 %1264  ;;  %v1263_v7 = vpop.permute.xlu0 %1262 }
 0x48e   :  { %v1297_v37 = vsel %vm45_vm0, %v2515_v42, %v1265_v43  ;;  %v1296_v35 = vsel %vm45_vm0, %v2498_v5, %v1263_v7 }
 0x48f   :  { %1313 = vst [vmem:[#allocation3 + $0x78] sm:$0xff] %v1297_v37 }
 0x490   :  { %1312 = vst [vmem:[#allocation3 + $0x70] sm:$0xff] %v1296_v35 }
 0x491   :  { %1342 = dma.vmem_to_hbm [thread:$0]  %s1335_s10, 2048, %s1337_s17, [#allocation4], %s1589_s18, %s1589_s18, %s1590_s19  }
 0x492   :  { %1583 = dma.done.wait [#allocation4], 2048  }
 0x493   :  { %1584 = vsyncadd [#allocation4], 4294965248 }
 0x494   :  { %1347 = vsyncpa [#allocation4], 1 }

</bundles_post_ra>
